<compile_context>
chip_gen: v5e
topology: v5e:2x2
jax: 0.10.0
libtpu: 0.0.40
codegen_flags: <defaults>
</compile_context>

<pallas_src>
import functools

import jax
import jax.numpy as jnp
from jax.experimental import pallas as pl
from jax.experimental.pallas import tpu as pltpu

LN_EPS = 1e-5


# ----------------------------------------------------------------------------
# In-kernel helpers (f32 elementwise math)
# ----------------------------------------------------------------------------
def _layernorm(x, gamma, beta):
    mu = jnp.mean(x, axis=-1, keepdims=True)
    xc = x - mu
    var = jnp.mean(xc * xc, axis=-1, keepdims=True)
    return xc * jax.lax.rsqrt(var + LN_EPS) * gamma + beta


def _gelu(x):
    # exact (erf) GELU, matching torch.nn.GELU default
    return 0.5 * x * (1.0 + jax.lax.erf(x * (2.0 ** -0.5)))


# ----------------------------------------------------------------------------
# Fused kernel: one (batch element, layer) per grid step
# ----------------------------------------------------------------------------
def _linformer_layer_kernel(x_ref,
                            aln_g_ref, aln_b_ref, wq_ref, wk_ref, wv_ref,
                            pk_t_ref, pv_t_ref, wo_ref, bo_ref,
                            fln_g_ref, fln_b_ref, w1_ref, b1_ref, w2_ref,
                            b2_ref,
                            o_ref, x_acc, *, n_heads, dim_head):
    l = pl.program_id(1)
    N, D = x_acc.shape
    H, Dh = n_heads, dim_head
    Kp = pk_t_ref.shape[0]
    bf16 = jnp.bfloat16

    # Load the residual stream into the layer-carry accumulator at layer 0.
    @pl.when(l == 0)
    def _():
        x_acc[...] = x_ref[0]

    x = x_acc[...]                                            # (N, D) f32

    # -------- PreNorm -> LinformerSelfAttention -> residual ------------------
    y = _layernorm(x, aln_g_ref[...], aln_b_ref[...])         # (N, D) f32
    yb = y.astype(bf16)

    # Fused Q projection: one lane-dense (N,D)x(D,H*Dh) MXU matmul
    # (softmax scale already folded into Wq).
    q = jnp.dot(yb, wq_ref[...], preferred_element_type=jnp.float32)   # (N, H*Dh)

    # Reassociated Linformer K/V path: (pk^T @ y) @ Wk  -> ~N/K fewer FLOPs.
    # Single f32->bf16 cast per projected activation.
    yk = jnp.dot(pk_t_ref[...], yb,
                 preferred_element_type=jnp.float32).astype(bf16)      # (Kp, D)
    yv = jnp.dot(pv_t_ref[...], yb,
                 preferred_element_type=jnp.float32).astype(bf16)      # (Kp, D)
    k_proj = jnp.dot(yk, wk_ref[...],
                     preferred_element_type=jnp.float32)               # (Kp, H*Dh)
    v_proj = jnp.dot(yv, wv_ref[...],
                     preferred_element_type=jnp.float32)               # (Kp, H*Dh)

    qb = q.astype(bf16)
    kb = k_proj.astype(bf16)
    vb = v_proj.astype(bf16)

    # Attention core per head (contraction depth is Dh per head regardless of
    # layout); heads addressed by static lane slices -> no broadcasts, no 3-D
    # relayout transposes, no per-head f32 (N,D) slabs.
    ctx_heads = []
    for h in range(H):
        lo = h * Dh
        qh = qb[:, lo:lo + Dh]                                # (N, Dh)
        kh = kb[:, lo:lo + Dh]                                # (Kp, Dh)
        vh = vb[:, lo:lo + Dh]                                # (Kp, Dh)
        dots = jax.lax.dot_general(qh, kh, (((1,), (1,)), ((), ())),
                                   preferred_element_type=jnp.float32)  # (N, Kp)
        dots = dots - jnp.max(dots, axis=-1, keepdims=True)
        pexp = jnp.exp(dots)
        pattn = pexp * pl.reciprocal(jnp.sum(pexp, axis=-1, keepdims=True),
                                     approx=True)
        ctx_heads.append(jnp.dot(pattn.astype(bf16), vh,
                                 preferred_element_type=jnp.float32))    # (N, Dh)
    ctx = jnp.concatenate(ctx_heads, axis=-1)                 # (N, H*Dh) = concat heads

    # Output projection as one full-width matmul: concat-heads @ Wo.
    attn_out = jnp.dot(ctx.astype(bf16), wo_ref[...],
                       preferred_element_type=jnp.float32) + bo_ref[...]
    x = x + attn_out

    # -------- PreNorm -> FeedForward(GELU, mult=4) -> residual ----------------
    y2 = _layernorm(x, fln_g_ref[...], fln_b_ref[...])
    hid = jnp.dot(y2.astype(bf16), w1_ref[...],
                  preferred_element_type=jnp.float32) + b1_ref[...]
    hid = _gelu(hid)
    x = x + jnp.dot(hid.astype(bf16), w2_ref[...],
                    preferred_element_type=jnp.float32) + b2_ref[...]

    # Carry to the next layer; emit only after the last layer.
    x_acc[...] = x

    @pl.when(l == pl.num_programs(1) - 1)
    def _():
        # TODO(synk): emit bf16 here if downstream accepts it (halves writeback).
        o_ref[0] = x.astype(o_ref.dtype)


# ----------------------------------------------------------------------------
# Wrapper: parameter prep (depth-stacked, scale folded, bf16) + pallas_call
# ----------------------------------------------------------------------------
def _layer_spec(arr):
    """BlockSpec selecting one layer (leading depth axis squeezed)."""
    nrest = arr.ndim - 1
    return pl.BlockSpec((None,) + tuple(arr.shape[1:]),
                        lambda b, l, _n=nrest: (l,) + (0,) * _n)


def _prep_layers(layers, *, dim_head):
    """Reference-layout f32 params -> depth-stacked weights (bf16 matmul operands)."""
    scale = dim_head ** -0.5
    bf16, f32 = jnp.bfloat16, jnp.float32

    def stack(fn):
        return jnp.stack([fn(layer) for layer in layers], axis=0)

    a = lambda l: l["attn"]
    f = lambda l: l["ff"]

    return dict(
        aln_g=stack(lambda l: a(l)["ln_g"]).astype(f32),        # (depth,1,D)
        aln_b=stack(lambda l: a(l)["ln_b"]).astype(f32),
        wq=stack(lambda l: a(l)["wq"] * scale).astype(bf16),    # (depth,D,H*Dh)
        wk=stack(lambda l: a(l)["wk"]).astype(bf16),
        wv=stack(lambda l: a(l)["wv"]).astype(bf16),
        pk_t=stack(lambda l: a(l)["pk"].T).astype(bf16),        # (depth,K,N)
        pv_t=stack(lambda l: a(l)["pv"].T).astype(bf16),
        wo=stack(lambda l: a(l)["wo"]).astype(bf16),            # (depth,H*Dh,D)
        bo=stack(lambda l: a(l)["bo"]).astype(f32),             # (depth,1,D)
        fln_g=stack(lambda l: f(l)["ln_g"]).astype(f32),
        fln_b=stack(lambda l: f(l)["ln_b"]).astype(f32),
        w1=stack(lambda l: f(l)["w1"]).astype(bf16),            # (depth,D,4D)
        b1=stack(lambda l: f(l)["b1"]).astype(f32),
        w2=stack(lambda l: f(l)["w2"]).astype(bf16),            # (depth,4D,D)
        b2=stack(lambda l: f(l)["b2"]).astype(f32),
    )


def _vmem_limit_bytes(N, D, Kp, inner, n_heads):
    """Scoped-VMEM budget from actually-resident buffers (with 2x margin)."""
    bf16_w = 2 * (3 * D * inner + inner * D + 8 * D * D + 2 * Kp * N)  # per-layer bf16
    f32_w = 4 * (4 * D + 2 * D + 4 * D)                                # LN + biases
    weights = 2 * (bf16_w + f32_w)                 # double-buffered layer weights
    io = 2 * 2 * (N * D * 4)                       # x-in + out blocks, double-buffered
    scratch = N * D * 4                            # residual-stream accumulator
    inter = 4 * (3 * N * D + 3 * N * inner + 2 * Kp * D + 2 * Kp * inner
                 + 3 * n_heads * N * Kp + 2 * N * 4 * D)
    est = weights + io + scratch + inter
    return int(min(64 * 1024 * 1024, max(2 * est, 16 * 1024 * 1024)))


def linformer_forward(x, layers, *, n_heads, dim_head):
    B, N, D = x.shape
    depth = len(layers)
    p = _prep_layers(layers, dim_head=dim_head)

    order = ["aln_g", "aln_b", "wq", "wk", "wv", "pk_t", "pv_t", "wo", "bo",
             "fln_g", "fln_b", "w1", "b1", "w2", "b2"]
    ops = [p[k] for k in order]

    kern = functools.partial(_linformer_layer_kernel,
                             n_heads=n_heads, dim_head=dim_head)
    in_specs = ([pl.BlockSpec((1, N, D), lambda b, l: (b, 0, 0))]
                + [_layer_spec(a) for a in ops])

    Kp = p["pk_t"].shape[1]
    vmem_limit = _vmem_limit_bytes(N, D, Kp, n_heads * dim_head, n_heads)

    return pl.pallas_call(
        kern,
        out_shape=jax.ShapeDtypeStruct((B, N, D), jnp.float32),
        grid=(B, depth),
        in_specs=in_specs,
        out_specs=pl.BlockSpec((1, N, D), lambda b, l: (b, 0, 0)),
        scratch_shapes=[pltpu.VMEM((N, D), jnp.float32)],   # residual-stream carry
        compiler_params=pltpu.CompilerParams(
            dimension_semantics=("parallel", "arbitrary"),
            vmem_limit_bytes=vmem_limit),
    )(x, *ops)


# ----------------------------------------------------------------------------
# Pure-JAX f32 reference (PyTorch-equivalent math) for a tolerance check
# ----------------------------------------------------------------------------
def _reference_forward(x, layers, *, n_heads, dim_head):
    scale = dim_head ** -0.5

    def ln(v, g, b):
        mu = v.mean(-1, keepdims=True)
        var = ((v - mu) ** 2).mean(-1, keepdims=True)
        return (v - mu) / jnp.sqrt(var + LN_EPS) * g + b

    out = x
    H, Dh = n_heads, dim_head
    for layer in layers:
        a, f = layer["attn"], layer["ff"]
        y = ln(out, a["ln_g"], a["ln_b"])
        q = y @ a["wq"]
        kk = jnp.einsum('bnd,nk->bkd', y @ a["wk"], a["pk"])
        vv = jnp.einsum('bnd,nk->bkd', y @ a["wv"], a["pv"])
        B, N, _ = q.shape
        K = kk.shape[1]
        qh = q.reshape(B, N, H, Dh).transpose(0, 2, 1, 3)
        kh = kk.reshape(B, K, H, Dh).transpose(0, 2, 1, 3)
        vh = vv.reshape(B, K, H, Dh).transpose(0, 2, 1, 3)
        dots = jnp.einsum('bhne,bhke->bhnk', qh, kh) * scale
        attn = jax.nn.softmax(dots, axis=-1)
        ctx = jnp.einsum('bhnk,bhke->bhne', attn, vh)
        ctx = ctx.transpose(0, 2, 1, 3).reshape(B, N, H * Dh)
        out = out + ctx @ a["wo"] + a["bo"]
        y2 = ln(out, f["ln_g"], f["ln_b"])
        hid = jax.nn.gelu(y2 @ f["w1"] + f["b1"], approximate=False)
        out = out + hid @ f["w2"] + f["b2"]
    return out


# ----------------------------------------------------------------------------
# Deterministic parameter construction (reference/PyTorch-like layout, f32)
# ----------------------------------------------------------------------------
def make_params(key, *, dim, seq_len, depth, k, n_heads, dim_head):
    inner = n_heads * dim_head
    layers = []
    for _ in range(depth):
        keys = jax.random.split(key, 16)
        key = keys[-1]
        s = 0.02
        attn = {
            "ln_g": jnp.ones((1, dim), jnp.float32),
            "ln_b": jnp.zeros((1, dim), jnp.float32),
            "wq": s * jax.random.normal(keys[0], (dim, inner), jnp.float32),
            "wk": s * jax.random.normal(keys[1], (dim, inner), jnp.float32),
            "wv": s * jax.random.normal(keys[2], (dim, inner), jnp.float32),
            "pk": s * jax.random.normal(keys[3], (seq_len, k), jnp.float32),
            "pv": s * jax.random.normal(keys[4], (seq_len, k), jnp.float32),
            "wo": s * jax.random.normal(keys[5], (inner, dim), jnp.float32),
            "bo": s * jax.random.normal(keys[6], (1, dim), jnp.float32),
        }
        ff = {
            "ln_g": jnp.ones((1, dim), jnp.float32),
            "ln_b": jnp.zeros((1, dim), jnp.float32),
            "w1": s * jax.random.normal(keys[7], (dim, 4 * dim), jnp.float32),
            "b1": s * jax.random.normal(keys[8], (1, 4 * dim), jnp.float32),
            "w2": s * jax.random.normal(keys[9], (4 * dim, dim), jnp.float32),
            "b2": s * jax.random.normal(keys[10], (1, dim), jnp.float32),
        }
        layers.append({"attn": attn, "ff": ff})
    return layers


# ----------------------------------------------------------------------------
if __name__ == "__main__":
    # Small, module-consistent shapes:
    #   input_dim (embedding dim) = 32, output_dim (seq len) = 16, depth = 2,
    #   k = 8, n_heads = 4, dim_head = 32 // 4 = 8.
    # (Far below a (8,128) vreg tile, so this run measures correctness, not perf.)
    B, N, D = 2, 16, 32
    DEPTH, K, HEADS = 2, 8, 4
    DIM_HEAD = D // HEADS

    key = jax.random.PRNGKey(0)
    kx, kp = jax.random.split(key)
    x = jax.random.normal(kx, (B, N, D), jnp.float32)
    layers = make_params(kp, dim=D, seq_len=N, depth=DEPTH, k=K,
                         n_heads=HEADS, dim_head=DIM_HEAD)

    out = linformer_forward(x, layers, n_heads=HEADS, dim_head=DIM_HEAD)
    out = jax.block_until_ready(out)
    assert out.shape == (B, N, D) and out.dtype == jnp.float32

    # Tolerance-based check vs pure-f32 reference (bf16 matmuls + approx
    # reciprocal -> rounding-level deviations only).
    ref = _reference_forward(x, layers, n_heads=HEADS, dim_head=DIM_HEAD)
    err = float(jnp.max(jnp.abs(out - ref)))
    assert err < 5e-2, f"max|kernel - ref| too large: {err}"

    print("KERNEL_OK")
</pallas_src>

<mosaic_0001>
module attributes {stable_mosaic.version = 11 : i64} {
  func.func @_linformer_layer_kernel(%arg0: i32, %arg1: i32, %arg2: memref<1x16x32xf32, #tpu.memory_space<vmem>>, %arg3: memref<1x1x32xf32, #tpu.memory_space<vmem>>, %arg4: memref<1x1x32xf32, #tpu.memory_space<vmem>>, %arg5: memref<1x32x32xbf16, #tpu.memory_space<vmem>>, %arg6: memref<1x32x32xbf16, #tpu.memory_space<vmem>>, %arg7: memref<1x32x32xbf16, #tpu.memory_space<vmem>>, %arg8: memref<1x8x16xbf16, #tpu.memory_space<vmem>>, %arg9: memref<1x8x16xbf16, #tpu.memory_space<vmem>>, %arg10: memref<1x32x32xbf16, #tpu.memory_space<vmem>>, %arg11: memref<1x1x32xf32, #tpu.memory_space<vmem>>, %arg12: memref<1x1x32xf32, #tpu.memory_space<vmem>>, %arg13: memref<1x1x32xf32, #tpu.memory_space<vmem>>, %arg14: memref<1x32x128xbf16, #tpu.memory_space<vmem>>, %arg15: memref<1x1x128xf32, #tpu.memory_space<vmem>>, %arg16: memref<1x128x32xbf16, #tpu.memory_space<vmem>>, %arg17: memref<1x1x32xf32, #tpu.memory_space<vmem>>, %arg18: memref<1x16x32xf32, #tpu.memory_space<vmem>>, %arg19: memref<16x32xf32, #tpu.memory_space<vmem>>) attributes {dimension_semantics = [#tpu.dimension_semantics<parallel>, #tpu.dimension_semantics<arbitrary>], iteration_bounds = array<i64: 2, 2>, scalar_prefetch = 0 : i64, scratch_operands = 1 : i64, tpu.core_type = #tpu.core_type<tc>, window_params = [{transform_indices = @transform_0, window_bounds = array<i64: 1, 16, 32>}, {transform_indices = @transform_1, window_bounds = array<i64: 1, 1, 32>}, {transform_indices = @transform_2, window_bounds = array<i64: 1, 1, 32>}, {transform_indices = @transform_3, window_bounds = array<i64: 1, 32, 32>}, {transform_indices = @transform_4, window_bounds = array<i64: 1, 32, 32>}, {transform_indices = @transform_5, window_bounds = array<i64: 1, 32, 32>}, {transform_indices = @transform_6, window_bounds = array<i64: 1, 8, 16>}, {transform_indices = @transform_7, window_bounds = array<i64: 1, 8, 16>}, {transform_indices = @transform_8, window_bounds = array<i64: 1, 32, 32>}, {transform_indices = @transform_9, window_bounds = array<i64: 1, 1, 32>}, {transform_indices = @transform_10, window_bounds = array<i64: 1, 1, 32>}, {transform_indices = @transform_11, window_bounds = array<i64: 1, 1, 32>}, {transform_indices = @transform_12, window_bounds = array<i64: 1, 32, 128>}, {transform_indices = @transform_13, window_bounds = array<i64: 1, 1, 128>}, {transform_indices = @transform_14, window_bounds = array<i64: 1, 128, 32>}, {transform_indices = @transform_15, window_bounds = array<i64: 1, 1, 32>}, {transform_indices = @transform_16, window_bounds = array<i64: 1, 16, 32>}]} {
    %c0_i32 = arith.constant 0 : i32
    %0 = arith.cmpi eq, %arg1, %c0_i32 : i32
    %1 = arith.extui %0 : i1 to i32
    %c0_i32_0 = arith.constant 0 : i32
    %2 = arith.cmpi ne, %1, %c0_i32_0 : i32
    scf.if %2 {
      %c0_86 = arith.constant 0 : index
      %c0_87 = arith.constant 0 : index
      %c0_88 = arith.constant 0 : index
      %176 = vector.load %arg2[%c0_86, %c0_87, %c0_88] : memref<1x16x32xf32, #tpu.memory_space<vmem>>, vector<1x16x32xf32>
      %177 = vector.shape_cast %176 : vector<1x16x32xf32> to vector<16x32xf32>
      %c0_89 = arith.constant 0 : index
      %c0_90 = arith.constant 0 : index
      %178 = vector.load %arg19[%c0_89, %c0_90] : memref<16x32xf32, #tpu.memory_space<vmem>>, vector<16x32xf32>
      tpu.vector_store %arg19[%c0_89, %c0_90], %177 {strides = array<i32>} : memref<16x32xf32, #tpu.memory_space<vmem>>, vector<16x32xf32>,
    } else {
    }
    %c0 = arith.constant 0 : index
    %c0_1 = arith.constant 0 : index
    %3 = vector.load %arg19[%c0, %c0_1] : memref<16x32xf32, #tpu.memory_space<vmem>>, vector<16x32xf32>
    %c0_2 = arith.constant 0 : index
    %c0_3 = arith.constant 0 : index
    %c0_4 = arith.constant 0 : index
    %4 = vector.load %arg3[%c0_2, %c0_3, %c0_4] : memref<1x1x32xf32, #tpu.memory_space<vmem>>, vector<1x1x32xf32>
    %5 = vector.shape_cast %4 : vector<1x1x32xf32> to vector<1x32xf32>
    %c0_5 = arith.constant 0 : index
    %c0_6 = arith.constant 0 : index
    %c0_7 = arith.constant 0 : index
    %6 = vector.load %arg4[%c0_5, %c0_6, %c0_7] : memref<1x1x32xf32, #tpu.memory_space<vmem>>, vector<1x1x32xf32>
    %7 = vector.shape_cast %6 : vector<1x1x32xf32> to vector<1x32xf32>
    %cst = arith.constant dense<0.000000e+00> : vector<16xf32>
    %8 = vector.multi_reduction <add>, %3, %cst [1] : vector<16x32xf32> to vector<16xf32>
    %9 = vector.shape_cast %8 : vector<16xf32> to vector<16x1xf32>
    %cst_8 = arith.constant 3.200000e+01 : f32
    %10 = vector.broadcast %cst_8 : f32 to vector<16x1xf32>
    %11 = arith.divf %9, %10 : vector<16x1xf32>
    %12 = vector.broadcast %11 : vector<16x1xf32> to vector<16x32xf32>
    %13 = arith.subf %3, %12 : vector<16x32xf32>
    %14 = arith.mulf %13, %13 : vector<16x32xf32>
    %cst_9 = arith.constant dense<0.000000e+00> : vector<16xf32>
    %15 = vector.multi_reduction <add>, %14, %cst_9 [1] : vector<16x32xf32> to vector<16xf32>
    %16 = vector.shape_cast %15 : vector<16xf32> to vector<16x1xf32>
    %cst_10 = arith.constant 3.200000e+01 : f32
    %17 = vector.broadcast %cst_10 : f32 to vector<16x1xf32>
    %18 = arith.divf %16, %17 : vector<16x1xf32>
    %cst_11 = arith.constant 9.99999974E-6 : f32
    %19 = vector.broadcast %cst_11 : f32 to vector<16x1xf32>
    %20 = arith.addf %18, %19 : vector<16x1xf32>
    %21 = math.rsqrt %20 : vector<16x1xf32>
    %22 = vector.broadcast %21 : vector<16x1xf32> to vector<16x32xf32>
    %23 = arith.mulf %13, %22 : vector<16x32xf32>
    %24 = vector.broadcast %5 : vector<1x32xf32> to vector<16x32xf32>
    %25 = arith.mulf %23, %24 : vector<16x32xf32>
    %26 = vector.broadcast %7 : vector<1x32xf32> to vector<16x32xf32>
    %27 = arith.addf %25, %26 : vector<16x32xf32>
    %28 = arith.truncf %27 : vector<16x32xf32> to vector<16x32xbf16>
    %c0_12 = arith.constant 0 : index
    %c0_13 = arith.constant 0 : index
    %c0_14 = arith.constant 0 : index
    %29 = vector.load %arg5[%c0_12, %c0_13, %c0_14] : memref<1x32x32xbf16, #tpu.memory_space<vmem>>, vector<1x32x32xbf16>
    %30 = vector.shape_cast %29 : vector<1x32x32xbf16> to vector<32x32xbf16>
    %cst_15 = arith.constant dense<0.000000e+00> : vector<16x32xf32>
    %31 = tpu.matmul %28, %30, %cst_15 {dimension_numbers = #tpu.dot_dimension_numbers<[1], [0], [0], [1], [0, 0, 1, 1], [], []>} : vector<16x32xbf16>, vector<32x32xbf16>, vector<16x32xf32> -> vector<16x32xf32>
    %c0_16 = arith.constant 0 : index
    %c0_17 = arith.constant 0 : index
    %c0_18 = arith.constant 0 : index
    %32 = vector.load %arg8[%c0_16, %c0_17, %c0_18] : memref<1x8x16xbf16, #tpu.memory_space<vmem>>, vector<1x8x16xbf16>
    %33 = vector.shape_cast %32 : vector<1x8x16xbf16> to vector<8x16xbf16>
    %cst_19 = arith.constant dense<0.000000e+00> : vector<8x32xf32>
    %34 = tpu.matmul %33, %28, %cst_19 {dimension_numbers = #tpu.dot_dimension_numbers<[1], [0], [0], [1], [0, 0, 1, 1], [], []>} : vector<8x16xbf16>, vector<16x32xbf16>, vector<8x32xf32> -> vector<8x32xf32>
    %35 = arith.truncf %34 : vector<8x32xf32> to vector<8x32xbf16>
    %c0_20 = arith.constant 0 : index
    %c0_21 = arith.constant 0 : index
    %c0_22 = arith.constant 0 : index
    %36 = vector.load %arg9[%c0_20, %c0_21, %c0_22] : memref<1x8x16xbf16, #tpu.memory_space<vmem>>, vector<1x8x16xbf16>
    %37 = vector.shape_cast %36 : vector<1x8x16xbf16> to vector<8x16xbf16>
    %cst_23 = arith.constant dense<0.000000e+00> : vector<8x32xf32>
    %38 = tpu.matmul %37, %28, %cst_23 {dimension_numbers = #tpu.dot_dimension_numbers<[1], [0], [0], [1], [0, 0, 1, 1], [], []>} : vector<8x16xbf16>, vector<16x32xbf16>, vector<8x32xf32> -> vector<8x32xf32>
    %39 = arith.truncf %38 : vector<8x32xf32> to vector<8x32xbf16>
    %c0_24 = arith.constant 0 : index
    %c0_25 = arith.constant 0 : index
    %c0_26 = arith.constant 0 : index
    %40 = vector.load %arg6[%c0_24, %c0_25, %c0_26] : memref<1x32x32xbf16, #tpu.memory_space<vmem>>, vector<1x32x32xbf16>
    %41 = vector.shape_cast %40 : vector<1x32x32xbf16> to vector<32x32xbf16>
    %cst_27 = arith.constant dense<0.000000e+00> : vector<8x32xf32>
    %42 = tpu.matmul %35, %41, %cst_27 {dimension_numbers = #tpu.dot_dimension_numbers<[1], [0], [0], [1], [0, 0, 1, 1], [], []>} : vector<8x32xbf16>, vector<32x32xbf16>, vector<8x32xf32> -> vector<8x32xf32>
    %c0_28 = arith.constant 0 : index
    %c0_29 = arith.constant 0 : index
    %c0_30 = arith.constant 0 : index
    %43 = vector.load %arg7[%c0_28, %c0_29, %c0_30] : memref<1x32x32xbf16, #tpu.memory_space<vmem>>, vector<1x32x32xbf16>
    %44 = vector.shape_cast %43 : vector<1x32x32xbf16> to vector<32x32xbf16>
    %cst_31 = arith.constant dense<0.000000e+00> : vector<8x32xf32>
    %45 = tpu.matmul %39, %44, %cst_31 {dimension_numbers = #tpu.dot_dimension_numbers<[1], [0], [0], [1], [0, 0, 1, 1], [], []>} : vector<8x32xbf16>, vector<32x32xbf16>, vector<8x32xf32> -> vector<8x32xf32>
    %46 = arith.truncf %31 : vector<16x32xf32> to vector<16x32xbf16>
    %47 = arith.truncf %42 : vector<8x32xf32> to vector<8x32xbf16>
    %48 = arith.truncf %45 : vector<8x32xf32> to vector<8x32xbf16>
    %49 = vector.extract_strided_slice %46 {offsets = [0, 0], sizes = [16, 8], strides = [1, 1]} : vector<16x32xbf16> to vector<16x8xbf16>
    %50 = vector.extract_strided_slice %47 {offsets = [0, 0], sizes = [8, 8], strides = [1, 1]} : vector<8x32xbf16> to vector<8x8xbf16>
    %51 = vector.extract_strided_slice %48 {offsets = [0, 0], sizes = [8, 8], strides = [1, 1]} : vector<8x32xbf16> to vector<8x8xbf16>
    %cst_32 = arith.constant dense<0.000000e+00> : vector<16x8xf32>
    %52 = tpu.matmul %49, %50, %cst_32 {dimension_numbers = #tpu.dot_dimension_numbers<[1], [1], [0], [0], [0, 0, 1, 0], [], []>} : vector<16x8xbf16>, vector<8x8xbf16>, vector<16x8xf32> -> vector<16x8xf32>
    %cst_33 = arith.constant dense<0xFF800000> : vector<16xf32>
    %53 = vector.multi_reduction <maximumf>, %52, %cst_33 [1] : vector<16x8xf32> to vector<16xf32>
    %54 = vector.shape_cast %53 : vector<16xf32> to vector<16x1xf32>
    %55 = vector.broadcast %54 : vector<16x1xf32> to vector<16x8xf32>
    %56 = arith.subf %52, %55 : vector<16x8xf32>
    %57 = math.exp %56 : vector<16x8xf32>
    %cst_34 = arith.constant dense<0.000000e+00> : vector<16xf32>
    %58 = vector.multi_reduction <add>, %57, %cst_34 [1] : vector<16x8xf32> to vector<16xf32>
    %59 = vector.shape_cast %58 : vector<16xf32> to vector<16x1xf32>
    %60 = tpu.reciprocal %59 {approx = true} : vector<16x1xf32> -> vector<16x1xf32>
    %61 = vector.broadcast %60 : vector<16x1xf32> to vector<16x8xf32>
    %62 = arith.mulf %57, %61 : vector<16x8xf32>
    %63 = arith.truncf %62 : vector<16x8xf32> to vector<16x8xbf16>
    %cst_35 = arith.constant dense<0.000000e+00> : vector<16x8xf32>
    %64 = tpu.matmul %63, %51, %cst_35 {dimension_numbers = #tpu.dot_dimension_numbers<[1], [0], [0], [1], [0, 0, 1, 1], [], []>} : vector<16x8xbf16>, vector<8x8xbf16>, vector<16x8xf32> -> vector<16x8xf32>
    %65 = vector.extract_strided_slice %46 {offsets = [0, 8], sizes = [16, 8], strides = [1, 1]} : vector<16x32xbf16> to vector<16x8xbf16>
    %66 = vector.extract_strided_slice %47 {offsets = [0, 8], sizes = [8, 8], strides = [1, 1]} : vector<8x32xbf16> to vector<8x8xbf16>
    %67 = vector.extract_strided_slice %48 {offsets = [0, 8], sizes = [8, 8], strides = [1, 1]} : vector<8x32xbf16> to vector<8x8xbf16>
    %cst_36 = arith.constant dense<0.000000e+00> : vector<16x8xf32>
    %68 = tpu.matmul %65, %66, %cst_36 {dimension_numbers = #tpu.dot_dimension_numbers<[1], [1], [0], [0], [0, 0, 1, 0], [], []>} : vector<16x8xbf16>, vector<8x8xbf16>, vector<16x8xf32> -> vector<16x8xf32>
    %cst_37 = arith.constant dense<0xFF800000> : vector<16xf32>
    %69 = vector.multi_reduction <maximumf>, %68, %cst_37 [1] : vector<16x8xf32> to vector<16xf32>
    %70 = vector.shape_cast %69 : vector<16xf32> to vector<16x1xf32>
    %71 = vector.broadcast %70 : vector<16x1xf32> to vector<16x8xf32>
    %72 = arith.subf %68, %71 : vector<16x8xf32>
    %73 = math.exp %72 : vector<16x8xf32>
    %cst_38 = arith.constant dense<0.000000e+00> : vector<16xf32>
    %74 = vector.multi_reduction <add>, %73, %cst_38 [1] : vector<16x8xf32> to vector<16xf32>
    %75 = vector.shape_cast %74 : vector<16xf32> to vector<16x1xf32>
    %76 = tpu.reciprocal %75 {approx = true} : vector<16x1xf32> -> vector<16x1xf32>
    %77 = vector.broadcast %76 : vector<16x1xf32> to vector<16x8xf32>
    %78 = arith.mulf %73, %77 : vector<16x8xf32>
    %79 = arith.truncf %78 : vector<16x8xf32> to vector<16x8xbf16>
    %cst_39 = arith.constant dense<0.000000e+00> : vector<16x8xf32>
    %80 = tpu.matmul %79, %67, %cst_39 {dimension_numbers = #tpu.dot_dimension_numbers<[1], [0], [0], [1], [0, 0, 1, 1], [], []>} : vector<16x8xbf16>, vector<8x8xbf16>, vector<16x8xf32> -> vector<16x8xf32>
    %81 = vector.extract_strided_slice %46 {offsets = [0, 16], sizes = [16, 8], strides = [1, 1]} : vector<16x32xbf16> to vector<16x8xbf16>
    %82 = vector.extract_strided_slice %47 {offsets = [0, 16], sizes = [8, 8], strides = [1, 1]} : vector<8x32xbf16> to vector<8x8xbf16>
    %83 = vector.extract_strided_slice %48 {offsets = [0, 16], sizes = [8, 8], strides = [1, 1]} : vector<8x32xbf16> to vector<8x8xbf16>
    %cst_40 = arith.constant dense<0.000000e+00> : vector<16x8xf32>
    %84 = tpu.matmul %81, %82, %cst_40 {dimension_numbers = #tpu.dot_dimension_numbers<[1], [1], [0], [0], [0, 0, 1, 0], [], []>} : vector<16x8xbf16>, vector<8x8xbf16>, vector<16x8xf32> -> vector<16x8xf32>
    %cst_41 = arith.constant dense<0xFF800000> : vector<16xf32>
    %85 = vector.multi_reduction <maximumf>, %84, %cst_41 [1] : vector<16x8xf32> to vector<16xf32>
    %86 = vector.shape_cast %85 : vector<16xf32> to vector<16x1xf32>
    %87 = vector.broadcast %86 : vector<16x1xf32> to vector<16x8xf32>
    %88 = arith.subf %84, %87 : vector<16x8xf32>
    %89 = math.exp %88 : vector<16x8xf32>
    %cst_42 = arith.constant dense<0.000000e+00> : vector<16xf32>
    %90 = vector.multi_reduction <add>, %89, %cst_42 [1] : vector<16x8xf32> to vector<16xf32>
    %91 = vector.shape_cast %90 : vector<16xf32> to vector<16x1xf32>
    %92 = tpu.reciprocal %91 {approx = true} : vector<16x1xf32> -> vector<16x1xf32>
    %93 = vector.broadcast %92 : vector<16x1xf32> to vector<16x8xf32>
    %94 = arith.mulf %89, %93 : vector<16x8xf32>
    %95 = arith.truncf %94 : vector<16x8xf32> to vector<16x8xbf16>
    %cst_43 = arith.constant dense<0.000000e+00> : vector<16x8xf32>
    %96 = tpu.matmul %95, %83, %cst_43 {dimension_numbers = #tpu.dot_dimension_numbers<[1], [0], [0], [1], [0, 0, 1, 1], [], []>} : vector<16x8xbf16>, vector<8x8xbf16>, vector<16x8xf32> -> vector<16x8xf32>
    %97 = vector.extract_strided_slice %46 {offsets = [0, 24], sizes = [16, 8], strides = [1, 1]} : vector<16x32xbf16> to vector<16x8xbf16>
    %98 = vector.extract_strided_slice %47 {offsets = [0, 24], sizes = [8, 8], strides = [1, 1]} : vector<8x32xbf16> to vector<8x8xbf16>
    %99 = vector.extract_strided_slice %48 {offsets = [0, 24], sizes = [8, 8], strides = [1, 1]} : vector<8x32xbf16> to vector<8x8xbf16>
    %cst_44 = arith.constant dense<0.000000e+00> : vector<16x8xf32>
    %100 = tpu.matmul %97, %98, %cst_44 {dimension_numbers = #tpu.dot_dimension_numbers<[1], [1], [0], [0], [0, 0, 1, 0], [], []>} : vector<16x8xbf16>, vector<8x8xbf16>, vector<16x8xf32> -> vector<16x8xf32>
    %cst_45 = arith.constant dense<0xFF800000> : vector<16xf32>
    %101 = vector.multi_reduction <maximumf>, %100, %cst_45 [1] : vector<16x8xf32> to vector<16xf32>
    %102 = vector.shape_cast %101 : vector<16xf32> to vector<16x1xf32>
    %103 = vector.broadcast %102 : vector<16x1xf32> to vector<16x8xf32>
    %104 = arith.subf %100, %103 : vector<16x8xf32>
    %105 = math.exp %104 : vector<16x8xf32>
    %cst_46 = arith.constant dense<0.000000e+00> : vector<16xf32>
    %106 = vector.multi_reduction <add>, %105, %cst_46 [1] : vector<16x8xf32> to vector<16xf32>
    %107 = vector.shape_cast %106 : vector<16xf32> to vector<16x1xf32>
    %108 = tpu.reciprocal %107 {approx = true} : vector<16x1xf32> -> vector<16x1xf32>
    %109 = vector.broadcast %108 : vector<16x1xf32> to vector<16x8xf32>
    %110 = arith.mulf %105, %109 : vector<16x8xf32>
    %111 = arith.truncf %110 : vector<16x8xf32> to vector<16x8xbf16>
    %cst_47 = arith.constant dense<0.000000e+00> : vector<16x8xf32>
    %112 = tpu.matmul %111, %99, %cst_47 {dimension_numbers = #tpu.dot_dimension_numbers<[1], [0], [0], [1], [0, 0, 1, 1], [], []>} : vector<16x8xbf16>, vector<8x8xbf16>, vector<16x8xf32> -> vector<16x8xf32>
    %113 = tpu.concatenate %64, %80, %96, %112 in 1 : vector<16x8xf32>, vector<16x8xf32>, vector<16x8xf32>, vector<16x8xf32> -> vector<16x32xf32>
    %114 = arith.truncf %113 : vector<16x32xf32> to vector<16x32xbf16>
    %c0_48 = arith.constant 0 : index
    %c0_49 = arith.constant 0 : index
    %c0_50 = arith.constant 0 : index
    %115 = vector.load %arg10[%c0_48, %c0_49, %c0_50] : memref<1x32x32xbf16, #tpu.memory_space<vmem>>, vector<1x32x32xbf16>
    %116 = vector.shape_cast %115 : vector<1x32x32xbf16> to vector<32x32xbf16>
    %cst_51 = arith.constant dense<0.000000e+00> : vector<16x32xf32>
    %117 = tpu.matmul %114, %116, %cst_51 {dimension_numbers = #tpu.dot_dimension_numbers<[1], [0], [0], [1], [0, 0, 1, 1], [], []>} : vector<16x32xbf16>, vector<32x32xbf16>, vector<16x32xf32> -> vector<16x32xf32>
    %c0_52 = arith.constant 0 : index
    %c0_53 = arith.constant 0 : index
    %c0_54 = arith.constant 0 : index
    %118 = vector.load %arg11[%c0_52, %c0_53, %c0_54] : memref<1x1x32xf32, #tpu.memory_space<vmem>>, vector<1x1x32xf32>
    %119 = vector.shape_cast %118 : vector<1x1x32xf32> to vector<1x32xf32>
    %120 = vector.broadcast %119 : vector<1x32xf32> to vector<16x32xf32>
    %121 = arith.addf %117, %120 : vector<16x32xf32>
    %122 = arith.addf %3, %121 : vector<16x32xf32>
    %c0_55 = arith.constant 0 : index
    %c0_56 = arith.constant 0 : index
    %c0_57 = arith.constant 0 : index
    %123 = vector.load %arg12[%c0_55, %c0_56, %c0_57] : memref<1x1x32xf32, #tpu.memory_space<vmem>>, vector<1x1x32xf32>
    %124 = vector.shape_cast %123 : vector<1x1x32xf32> to vector<1x32xf32>
    %c0_58 = arith.constant 0 : index
    %c0_59 = arith.constant 0 : index
    %c0_60 = arith.constant 0 : index
    %125 = vector.load %arg13[%c0_58, %c0_59, %c0_60] : memref<1x1x32xf32, #tpu.memory_space<vmem>>, vector<1x1x32xf32>
    %126 = vector.shape_cast %125 : vector<1x1x32xf32> to vector<1x32xf32>
    %cst_61 = arith.constant dense<0.000000e+00> : vector<16xf32>
    %127 = vector.multi_reduction <add>, %122, %cst_61 [1] : vector<16x32xf32> to vector<16xf32>
    %128 = vector.shape_cast %127 : vector<16xf32> to vector<16x1xf32>
    %cst_62 = arith.constant 3.200000e+01 : f32
    %129 = vector.broadcast %cst_62 : f32 to vector<16x1xf32>
    %130 = arith.divf %128, %129 : vector<16x1xf32>
    %131 = vector.broadcast %130 : vector<16x1xf32> to vector<16x32xf32>
    %132 = arith.subf %122, %131 : vector<16x32xf32>
    %133 = arith.mulf %132, %132 : vector<16x32xf32>
    %cst_63 = arith.constant dense<0.000000e+00> : vector<16xf32>
    %134 = vector.multi_reduction <add>, %133, %cst_63 [1] : vector<16x32xf32> to vector<16xf32>
    %135 = vector.shape_cast %134 : vector<16xf32> to vector<16x1xf32>
    %cst_64 = arith.constant 3.200000e+01 : f32
    %136 = vector.broadcast %cst_64 : f32 to vector<16x1xf32>
    %137 = arith.divf %135, %136 : vector<16x1xf32>
    %cst_65 = arith.constant 9.99999974E-6 : f32
    %138 = vector.broadcast %cst_65 : f32 to vector<16x1xf32>
    %139 = arith.addf %137, %138 : vector<16x1xf32>
    %140 = math.rsqrt %139 : vector<16x1xf32>
    %141 = vector.broadcast %140 : vector<16x1xf32> to vector<16x32xf32>
    %142 = arith.mulf %132, %141 : vector<16x32xf32>
    %143 = vector.broadcast %124 : vector<1x32xf32> to vector<16x32xf32>
    %144 = arith.mulf %142, %143 : vector<16x32xf32>
    %145 = vector.broadcast %126 : vector<1x32xf32> to vector<16x32xf32>
    %146 = arith.addf %144, %145 : vector<16x32xf32>
    %147 = arith.truncf %146 : vector<16x32xf32> to vector<16x32xbf16>
    %c0_66 = arith.constant 0 : index
    %c0_67 = arith.constant 0 : index
    %c0_68 = arith.constant 0 : index
    %148 = vector.load %arg14[%c0_66, %c0_67, %c0_68] : memref<1x32x128xbf16, #tpu.memory_space<vmem>>, vector<1x32x128xbf16>
    %149 = vector.shape_cast %148 : vector<1x32x128xbf16> to vector<32x128xbf16>
    %cst_69 = arith.constant dense<0.000000e+00> : vector<16x128xf32>
    %150 = tpu.matmul %147, %149, %cst_69 {dimension_numbers = #tpu.dot_dimension_numbers<[1], [0], [0], [1], [0, 0, 1, 1], [], []>} : vector<16x32xbf16>, vector<32x128xbf16>, vector<16x128xf32> -> vector<16x128xf32>
    %c0_70 = arith.constant 0 : index
    %c0_71 = arith.constant 0 : index
    %c0_72 = arith.constant 0 : index
    %151 = vector.load %arg15[%c0_70, %c0_71, %c0_72] : memref<1x1x128xf32, #tpu.memory_space<vmem>>, vector<1x1x128xf32>
    %152 = vector.shape_cast %151 : vector<1x1x128xf32> to vector<1x128xf32>
    %153 = vector.broadcast %152 : vector<1x128xf32> to vector<16x128xf32>
    %154 = arith.addf %150, %153 : vector<16x128xf32>
    %cst_73 = arith.constant 5.000000e-01 : f32
    %155 = vector.broadcast %cst_73 : f32 to vector<16x128xf32>
    %156 = arith.mulf %155, %154 : vector<16x128xf32>
    %cst_74 = arith.constant 0.707106769 : f32
    %157 = vector.broadcast %cst_74 : f32 to vector<16x128xf32>
    %158 = arith.mulf %154, %157 : vector<16x128xf32>
    %159 = math.erf %158 : vector<16x128xf32>
    %cst_75 = arith.constant 1.000000e+00 : f32
    %160 = vector.broadcast %cst_75 : f32 to vector<16x128xf32>
    %161 = arith.addf %160, %159 : vector<16x128xf32>
    %162 = arith.mulf %156, %161 : vector<16x128xf32>
    %163 = arith.truncf %162 : vector<16x128xf32> to vector<16x128xbf16>
    %c0_76 = arith.constant 0 : index
    %c0_77 = arith.constant 0 : index
    %c0_78 = arith.constant 0 : index
    %164 = vector.load %arg16[%c0_76, %c0_77, %c0_78] : memref<1x128x32xbf16, #tpu.memory_space<vmem>>, vector<1x128x32xbf16>
    %165 = vector.shape_cast %164 : vector<1x128x32xbf16> to vector<128x32xbf16>
    %cst_79 = arith.constant dense<0.000000e+00> : vector<16x32xf32>
    %166 = tpu.matmul %163, %165, %cst_79 {dimension_numbers = #tpu.dot_dimension_numbers<[1], [0], [0], [1], [0, 0, 1, 1], [], []>} : vector<16x128xbf16>, vector<128x32xbf16>, vector<16x32xf32> -> vector<16x32xf32>
    %167 = arith.addf %122, %166 : vector<16x32xf32>
    %c0_80 = arith.constant 0 : index
    %c0_81 = arith.constant 0 : index
    %c0_82 = arith.constant 0 : index
    %168 = vector.load %arg17[%c0_80, %c0_81, %c0_82] : memref<1x1x32xf32, #tpu.memory_space<vmem>>, vector<1x1x32xf32>
    %169 = vector.shape_cast %168 : vector<1x1x32xf32> to vector<1x32xf32>
    %170 = vector.broadcast %169 : vector<1x32xf32> to vector<16x32xf32>
    %171 = arith.addf %167, %170 : vector<16x32xf32>
    %c0_83 = arith.constant 0 : index
    %c0_84 = arith.constant 0 : index
    %172 = vector.load %arg19[%c0_83, %c0_84] : memref<16x32xf32, #tpu.memory_space<vmem>>, vector<16x32xf32>
    tpu.vector_store %arg19[%c0_83, %c0_84], %171 {strides = array<i32>} : memref<16x32xf32, #tpu.memory_space<vmem>>, vector<16x32xf32>,
    %c1_i32 = arith.constant 1 : i32
    %173 = arith.cmpi eq, %arg1, %c1_i32 : i32
    %174 = arith.extui %173 : i1 to i32
    %c0_i32_85 = arith.constant 0 : i32
    %175 = arith.cmpi ne, %174, %c0_i32_85 : i32
    scf.if %175 {
      %c0_86 = arith.constant 0 : index
      %c0_87 = arith.constant 0 : index
      %c0_88 = arith.constant 0 : index
      %176 = vector.load %arg18[%c0_86, %c0_87, %c0_88] : memref<1x16x32xf32, #tpu.memory_space<vmem>>, vector<1x16x32xf32>
      %177 = vector.shape_cast %176 : vector<1x16x32xf32> to vector<16x32xf32>
      %178 = vector.shape_cast %171 : vector<16x32xf32> to vector<1x16x32xf32>
      tpu.vector_store %arg18[%c0_86, %c0_87, %c0_88], %178 {strides = array<i32>} : memref<1x16x32xf32, #tpu.memory_space<vmem>>, vector<1x16x32xf32>,
    } else {
    }
    return
  }
  func.func @transform_0(%arg0: i32, %arg1: i32) -> (i32, i32, i32) {
    %c0_i32 = arith.constant 0 : i32
    %c0_i32_0 = arith.constant 0 : i32
    %c0_i32_1 = arith.constant 0 : i32
    return %arg0, %c0_i32, %c0_i32_0 : i32, i32, i32
  }
  func.func @transform_1(%arg0: i32, %arg1: i32) -> (i32, i32, i32) {
    %c0_i32 = arith.constant 0 : i32
    %c0_i32_0 = arith.constant 0 : i32
    %c0_i32_1 = arith.constant 0 : i32
    return %arg1, %c0_i32, %c0_i32_0 : i32, i32, i32
  }
  func.func @transform_2(%arg0: i32, %arg1: i32) -> (i32, i32, i32) {
    %c0_i32 = arith.constant 0 : i32
    %c0_i32_0 = arith.constant 0 : i32
    %c0_i32_1 = arith.constant 0 : i32
    return %arg1, %c0_i32, %c0_i32_0 : i32, i32, i32
  }
  func.func @transform_3(%arg0: i32, %arg1: i32) -> (i32, i32, i32) {
    %c0_i32 = arith.constant 0 : i32
    %c0_i32_0 = arith.constant 0 : i32
    %c0_i32_1 = arith.constant 0 : i32
    return %arg1, %c0_i32, %c0_i32_0 : i32, i32, i32
  }
  func.func @transform_4(%arg0: i32, %arg1: i32) -> (i32, i32, i32) {
    %c0_i32 = arith.constant 0 : i32
    %c0_i32_0 = arith.constant 0 : i32
    %c0_i32_1 = arith.constant 0 : i32
    return %arg1, %c0_i32, %c0_i32_0 : i32, i32, i32
  }
  func.func @transform_5(%arg0: i32, %arg1: i32) -> (i32, i32, i32) {
    %c0_i32 = arith.constant 0 : i32
    %c0_i32_0 = arith.constant 0 : i32
    %c0_i32_1 = arith.constant 0 : i32
    return %arg1, %c0_i32, %c0_i32_0 : i32, i32, i32
  }
  func.func @transform_6(%arg0: i32, %arg1: i32) -> (i32, i32, i32) {
    %c0_i32 = arith.constant 0 : i32
    %c0_i32_0 = arith.constant 0 : i32
    %c0_i32_1 = arith.constant 0 : i32
    return %arg1, %c0_i32, %c0_i32_0 : i32, i32, i32
  }
  func.func @transform_7(%arg0: i32, %arg1: i32) -> (i32, i32, i32) {
    %c0_i32 = arith.constant 0 : i32
    %c0_i32_0 = arith.constant 0 : i32
    %c0_i32_1 = arith.constant 0 : i32
    return %arg1, %c0_i32, %c0_i32_0 : i32, i32, i32
  }
  func.func @transform_8(%arg0: i32, %arg1: i32) -> (i32, i32, i32) {
    %c0_i32 = arith.constant 0 : i32
    %c0_i32_0 = arith.constant 0 : i32
    %c0_i32_1 = arith.constant 0 : i32
    return %arg1, %c0_i32, %c0_i32_0 : i32, i32, i32
  }
  func.func @transform_9(%arg0: i32, %arg1: i32) -> (i32, i32, i32) {
    %c0_i32 = arith.constant 0 : i32
    %c0_i32_0 = arith.constant 0 : i32
    %c0_i32_1 = arith.constant 0 : i32
    return %arg1, %c0_i32, %c0_i32_0 : i32, i32, i32
  }
  func.func @transform_10(%arg0: i32, %arg1: i32) -> (i32, i32, i32) {
    %c0_i32 = arith.constant 0 : i32
    %c0_i32_0 = arith.constant 0 : i32
    %c0_i32_1 = arith.constant 0 : i32
    return %arg1, %c0_i32, %c0_i32_0 : i32, i32, i32
  }
  func.func @transform_11(%arg0: i32, %arg1: i32) -> (i32, i32, i32) {
    %c0_i32 = arith.constant 0 : i32
    %c0_i32_0 = arith.constant 0 : i32
    %c0_i32_1 = arith.constant 0 : i32
    return %arg1, %c0_i32, %c0_i32_0 : i32, i32, i32
  }
  func.func @transform_12(%arg0: i32, %arg1: i32) -> (i32, i32, i32) {
    %c0_i32 = arith.constant 0 : i32
    %c0_i32_0 = arith.constant 0 : i32
    %c0_i32_1 = arith.constant 0 : i32
    return %arg1, %c0_i32, %c0_i32_0 : i32, i32, i32
  }
  func.func @transform_13(%arg0: i32, %arg1: i32) -> (i32, i32, i32) {
    %c0_i32 = arith.constant 0 : i32
    %c0_i32_0 = arith.constant 0 : i32
    %c0_i32_1 = arith.constant 0 : i32
    return %arg1, %c0_i32, %c0_i32_0 : i32, i32, i32
  }
  func.func @transform_14(%arg0: i32, %arg1: i32) -> (i32, i32, i32) {
    %c0_i32 = arith.constant 0 : i32
    %c0_i32_0 = arith.constant 0 : i32
    %c0_i32_1 = arith.constant 0 : i32
    return %arg1, %c0_i32, %c0_i32_0 : i32, i32, i32
  }
  func.func @transform_15(%arg0: i32, %arg1: i32) -> (i32, i32, i32) {
    %c0_i32 = arith.constant 0 : i32
    %c0_i32_0 = arith.constant 0 : i32
    %c0_i32_1 = arith.constant 0 : i32
    return %arg1, %c0_i32, %c0_i32_0 : i32, i32, i32
  }
  func.func @transform_16(%arg0: i32, %arg1: i32) -> (i32, i32, i32) {
    %c0_i32 = arith.constant 0 : i32
    %c0_i32_0 = arith.constant 0 : i32
    %c0_i32_1 = arith.constant 0 : i32
    return %arg0, %c0_i32, %c0_i32_0 : i32, i32, i32
  }
}

</mosaic_0001>

<bundles_post_ra>
// kernel: tpu_custom_call.1
= control target key start
LH: loop header
LB: loop body
LE: loop exit
PB: predicated region body
PF: predicated region fallthrough
CT: control target
= control target key end

     0   :  { %s3226_s0 = inlined_call_operand.vmem [shape: f32[2,16,32], index: 0, kind: input, shape index: {}]   ;;  %s3227_s1 = inlined_call_operand.hbm [shape: f32[2,1,32], index: 1, kind: input, shape index: {}]   ;;  %s3228_s2 = inlined_call_operand.hbm [shape: f32[2,1,32], index: 2, kind: input, shape index: {}]   ;;  %s3229_s3 = inlined_call_operand.vmem [shape: bf16[2,32,32], index: 3, kind: input, shape index: {}]   ;;  %s3230_s4 = inlined_call_operand.vmem [shape: bf16[2,32,32], index: 4, kind: input, shape index: {}]   ;;  %s3231_s5 = inlined_call_operand.vmem [shape: bf16[2,32,32], index: 5, kind: input, shape index: {}]   ;;  %s3232_s6 = inlined_call_operand.hbm [shape: bf16[2,8,16], index: 6, kind: input, shape index: {}]   ;;  %s3233_s7 = inlined_call_operand.hbm [shape: bf16[2,8,16], index: 7, kind: input, shape index: {}]   ;;  %s3234_s8 = inlined_call_operand.vmem [shape: bf16[2,32,32], index: 8, kind: input, shape index: {}]   ;;  %s3235_s9 = inlined_call_operand.vmem [shape: f32[2,1,32], index: 9, kind: input, shape index: {}]   ;;  %s3236_s10 = inlined_call_operand.vmem [shape: f32[2,1,32], index: 10, kind: input, shape index: {}]   ;;  %s3237_s11 = inlined_call_operand.vmem [shape: f32[2,1,32], index: 11, kind: input, shape index: {}]   ;;  %s3238_s12 = inlined_call_operand.hbm [shape: bf16[2,32,128], index: 12, kind: input, shape index: {}]   ;;  %s3239_s13 = inlined_call_operand.vmem [shape: f32[2,1,128], index: 13, kind: input, shape index: {}]   ;;  %s3240_s14 = inlined_call_operand.vmem [shape: bf16[2,128,32], index: 14, kind: input, shape index: {}]   ;;  %s3241_s15 = inlined_call_operand.vmem [shape: f32[2,1,32], index: 15, kind: input, shape index: {}]   ;;  %s3242_s16 = inlined_call_operand.hbm [shape: f32[2,16,32], index: 16, kind: output, shape index: {}]  }
   0x1   :  { %3262 = sst [smem:[#allocation35_spill]] %s3226_s0 }
   0x2   :  { %3263 = sst [smem:[#allocation36_spill]] %s3227_s1 }
   0x3   :  { %3264 = sst [smem:[#allocation37_spill]] %s3228_s2 }
   0x4   :  { %3265 = sst [smem:[#allocation38_spill]] %s3229_s3 }
   0x5   :  { %3266 = sst [smem:[#allocation39_spill]] %s3230_s4 }
   0x6   :  { %3267 = sst [smem:[#allocation40_spill]] %s3231_s5 }
   0x7   :  { %3268 = sst [smem:[#allocation41_spill]] %s3232_s6 }
   0x8   :  { %3269 = sst [smem:[#allocation42_spill]] %s3233_s7 }
   0x9   :  { %3270 = sst [smem:[#allocation43_spill]] %s3234_s8 }
   0xa   :  { %3271 = sst [smem:[#allocation44_spill]] %s3235_s9 }
   0xb   :  { %3272 = sst [smem:[#allocation45_spill]] %s3236_s10 }
   0xc   :  { %3273 = sst [smem:[#allocation46_spill]] %s3237_s11 }
   0xd   :  { %3274 = sst [smem:[#allocation47_spill]] %s3238_s12 }
   0xe   :  { %3275 = sst [smem:[#allocation48_spill]] %s3239_s13 }
   0xf   :  { %3276 = sst [smem:[#allocation49_spill]] %s3240_s14 }
  0x10   :  { %3277 = sst [smem:[#allocation50_spill]] %s3241_s15 }
  0x11   :  { %3278 = sst [smem:[#allocation51_spill]] %s3242_s16 }
  0x12   :  { %21 = vsyncpa [#allocation4], 0 }
  0x13   :  { %23 = vsyncpa [#allocation4 + $0x1], 0 }
  0x14   :  { %24 = vsyncpa [#allocation7], 0 }
  0x15   :  { %26 = vsyncpa [#allocation7 + $0x1], 0 }
  0x16   :  { %27 = vsyncpa [#allocation10], 0 }
  0x17   :  { %29 = vsyncpa [#allocation10 + $0x1], 0 }
  0x18   :  { %30 = vsyncpa [#allocation5], 0 }
  0x19   :  { %32 = vsyncpa [#allocation5 + $0x1], 0  ;;  %s2754_s21 = smov 0   ;;  %s2756_s22 = smov 0  }
  0x1a   :  { %s2758_s23 = smov 0   ;;  %s2760_s24 = smov 0  }
  0x1b   :  { %s2762_s25 = smov 0   ;;  %s2764_s26 = smov 0  }
  0x1c   :  { %s2766_s27 = smov 0   ;;  %s2768_s28 = smov 0  }
  0x1d   :  { %s2770_s29 = smov 0   ;;  %s2772_s30 = smov 0  }
  0x1e   :  { %s2774_s0 = smov 0  }
  0x1f LB: > { %3279 = sst [smem:[#allocation17_spill]] %s2617_s21  ;;  %s2808_s17 = sadd.s32 4294967295, %s2657_s0   ;;  %s2657_s0 = sphi %s2774_s0, %s38_s0   ;;  %s2653_s30 = sphi %s2772_s30, %s3346_s30   ;;  %s2649_s29 = sphi %s2770_s29, %s3345_s29   ;;  %s2645_s28 = sphi %s2768_s28, %s3344_s28   ;;  %s2641_s27 = sphi %s2766_s27, %s3343_s27   ;;  %s2637_s26 = sphi %s2764_s26, %s3342_s26   ;;  %s2633_s25 = sphi %s2762_s25, %s3341_s25   ;;  %s2629_s24 = sphi %s2760_s24, %s3340_s24   ;;  %s2625_s23 = sphi %s2758_s23, %s3339_s23   ;;  %s2621_s22 = sphi %s2756_s22, %s3338_s22   ;;  %s2617_s21 = sphi %s2754_s21, %s3337_s21  }
  0x20   : > { %3280 = sst [smem:[#allocation18_spill]] %s2621_s22  ;;  %s2028_s18 = sadd.s32 4294967294, %s2657_s0  }
  0x21   : > { %3281 = sst [smem:[#allocation19_spill]] %s2625_s23  ;;  %s47_s19 = sadd.s32 1, %s2649_s29 }
  0x22   : > { %3282 = sst [smem:[#allocation20_spill]] %s2633_s25  ;;  %s50_s20 = sadd.s32 1, %s2653_s30 }
  0x23   : > { %3283 = sst [smem:[#allocation21_spill]] %s2637_s26  ;;  %p48_p0 = scmp.ge.s32.totalorder %s47_s19, 2 }
  0x24   : > { %3284 = sst [smem:[#allocation22_spill]] %s2645_s28  ;;  %s83_s16 = sadd.s32 1, %s2637_s26 }
  0x25   : > { %3285 = sst [smem:[#allocation23_spill]] %s2649_s29  ;;  %p90_p1 = scmp.ne.s32.totalorder %s2637_s26, %s2633_s25 }
  0x26   : > { %3286 = sst [smem:[#allocation24_spill]] %s2653_s30  ;;  %p91_p2 = scmp.eq.s32.totalorder %s2657_s0, 0 }
  0x27   : > { %3287 = sst [smem:[#allocation25_spill]] %s2657_s0  ;;  %s3348_s19 = smov (%p48_p0, %s47_s19), 0 }
  0x28   : > { %3288 = sst [smem:[#allocation26_spill]] %s3348_s19  ;;  %s3350_s20 = smov (!%p48_p0, %s50_s20), %s2653_s30 }
  0x29   : > { %s80_s14 = ssub.s32 %s2649_s29, %s3348_s19  ;;  %p2822_p3 = por %p91_p2, %p90_p1 }
  0x2a   : > { %p52_p4 = scmp.ge.s32.totalorder %s3350_s20, 2  ;;  %p81_p5 = scmp.eq.s32.totalorder %s80_s14, 0 }
  0x2b   : > { %p96_p6 = scmp.ne.s32.totalorder %s2633_s25, %s2629_s24  ;;  %p97_p7 = scmp.eq.s32.totalorder %s2808_s17, 0 }
  0x2c   : > { %s3352_s20 = smov (%p52_p4, %s3350_s20), 0  ;;  %s473_s10 = sadd.s32 1, %s2625_s23 }
  0x2d   : > { %3290 = sst [smem:[#allocation27_spill]] %s3352_s20  ;;  %p2833_p8 = por %p97_p7, %p96_p6 }
  0x2e   : > { %s2831_s13 = scalar_select %p81_p5, %s2637_s26, %s83_s16  }
  0x2f   : > { %s470_s11 = ssub.s32 %s2653_s30, %s3352_s20  ;;  %p483_p10 = scmp.ne.s32.totalorder %s2625_s23, %s2621_s22 }
  0x30   : > { %3291 = sst [smem:[#allocation28_spill]] %s2831_s13  ;;  %p471_p9 = scmp.eq.s32.totalorder %s470_s11, 0 }
  0x31   : > { %p484_p11 = scmp.eq.s32.totalorder %s2808_s17, 3  ;;  %p489_p13 = scmp.ne.s32.totalorder %s2621_s22, %s2617_s21 }
  0x32   : > { %s2844_s14 = scalar_select %p471_p9, %s2625_s23, %s473_s10  }
  0x33   : > { %p2846_p12 = por %p484_p11, %p483_p10  ;;  %p490_p0 = scmp.eq.s32.totalorder %s2028_s18, 3 }
  0x34   : > { %3293 = sst [smem:[#allocation29_spill]] %s2844_s14  ;;  %p2209_p1 = scmp.lt.s32.totalorder %s2657_s0, 4 }
  0x35   : > { %s3294_s24 = scalar_select %p2846_p12, 1, 0 }
  0x36   : > { %s2854_s16 = sand.u32 1, %s2637_s26   ;;  %p2856_p2 = por %p490_p0, %p489_p13 }
  0x37   : > { %3295 = sst [smem:[#allocation30_spill]] %s3294_s24  ;;  %s535_s20 = sand.u32 1, %s2657_s0  }
  0x38   : > { %s3296_s11 = scalar_select %p2856_p2, 1, 0 }
  0x39   : > { %p2863_p4 = pnand %p2209_p1, %p2822_p3  ;;  %s3299_s2 = sld [smem:[#allocation37_spill]] }
  0x3a   : > { %3297 = sst [smem:[#allocation31_spill]] %s3296_s11  ;;  %s538_s26 = scalar_lea.vmem [#allocation6], %s2854_s16 }
  0x3b   : > { %s545_s23 = sshll.u32 %s538_s26, 4  ;;  %p2038_p5 = scmp.ge.s32.totalorder %s2657_s0, 1  ;;  %s546_s23 = int_to_ptr.vmem [resolvable:$true] %s545_s23 }
  0x3c   : > { %s2873_s11 = scalar_lea.sflag [#allocation7], %s535_s20  ;;  %p680_p3 = scmp.lt.s32.totalorder %s2657_s0, 5 }
  0x3d   : > { %s2031_s15 = sshll.u32 %s2854_s16, 2  ;;  %s2032_s21 = sshll.u32 %s2649_s29, 2 }
  0x3e   : > { %p2881_p6 = pnand %p2038_p5, %p680_p3  ;;  %s3301_s6 = sld [smem:[#allocation41_spill]] }
  0x3f   : > { %s541_s18 = scalar_lea.hbm %s3299_s2, %s2649_s29  ;;  %s3302_s7 = sld [smem:[#allocation42_spill]] }
  0x40   : > { %s543_s14 = sshll.u32 %s541_s18, 4  ;;  %s599_s8 = scalar_lea.vmem [#allocation9], %s2031_s15  ;;  %s544_s14 = int_to_ptr.hbm [resolvable:$true] %s543_s14 }
  0x41   : > { %2195 = dma.hbm_to_vmem [thread:$0]  (!%p2863_p4), %s544_s14, 16, %s546_s23, %s2873_s11  }
  0x42   : > { %s607_s23 = sshll.u32 %s599_s8, 4  ;;  %s2891_s0 = scalar_lea.sflag [#allocation10], %s535_s20  ;;  %s608_s23 = int_to_ptr.vmem [resolvable:$true] %s607_s23 }
  0x43   : > { %s3303_s1 = sld [smem:[#allocation36_spill]]  ;;  %s519_s8 = scalar_lea.sflag [#allocation4], %s2854_s16 }
  0x44   : > { %s584_s26 = scalar_lea.hbm %s3301_s6, %s2032_s21  ;;  %s580_s20 = scalar_lea.vmem [#allocation8], %s2031_s15 }
  0x45   : > { %s603_s9 = scalar_lea.hbm %s3302_s7, %s2032_s21  ;;  %s521_s21 = scalar_lea.vmem [#allocation3], %s2854_s16 }
  0x46   : > { %s605_s14 = sshll.u32 %s603_s9, 4  ;;  %s528_s6 = sshll.u32 %s521_s21, 4  ;;  %s606_s14 = int_to_ptr.hbm [resolvable:$true] %s605_s14  ;;  %s529_s6 = int_to_ptr.vmem [resolvable:$true] %s528_s6 }
  0x47   : > { %2201 = dma.hbm_to_vmem [thread:$0]  (!%p2863_p4), %s606_s14, 64, %s608_s23, %s2891_s0  }
  0x48   : > { %s586_s9 = sshll.u32 %s584_s26, 4  ;;  %s588_s7 = sshll.u32 %s580_s20, 4  ;;  %s587_s9 = int_to_ptr.hbm [resolvable:$true] %s586_s9  ;;  %s589_s7 = int_to_ptr.vmem [resolvable:$true] %s588_s7 }
  0x49   : > { %s524_s2 = scalar_lea.hbm %s3303_s1, %s2649_s29  ;;  %s2035_s23 = sshll.u32 %s2854_s16, 4 }
  0x4a   : > { %s526_s24 = sshll.u32 %s524_s2, 4  ;;  %s2151_s14 = sshll.u32 %s2649_s29, 4  ;;  %s527_s24 = int_to_ptr.hbm [resolvable:$true] %s526_s24 }
  0x4b   : > { %2192 = dma.hbm_to_vmem [thread:$0]  (!%p2863_p4), %s527_s24, 16, %s529_s6, %s519_s8  }
  0x4c   : > { %2198 = dma.hbm_to_vmem [thread:$0]  (!%p2863_p4), %s587_s9, 64, %s589_s7, %s2873_s11  }
  0x4d   : > { %s3304_s12 = sld [smem:[#allocation47_spill]]  ;;  %s644_s1 = scalar_lea.vmem [#allocation11], %s2035_s23 }
  0x4e   : > { %s652_s5 = sshll.u32 %s644_s1, 4  ;;  %s2659_s6 = smov 64   ;;  %s653_s5 = int_to_ptr.vmem [resolvable:$true] %s652_s5 }
  0x4f   : > { %s2660_s26 = smov 4  }
  0x51   : > { %684 = sbr.rel (%p2881_p6) target bundleno = 2231 (0x8b7), region = 84 }
  0x53   : > { %s649_s2 = scalar_lea.hbm %s3304_s12, %s2151_s14 }
  0x54   : > { %s650_s21 = sshll.u32 %s649_s2, 4  ;;  %s651_s21 = int_to_ptr.hbm [resolvable:$true] %s650_s21 }
  0x55   : > { %2204 = dma.hbm_to_vmem [thread:$0]  (!%p2863_p4), %s651_s21, 256, %s653_s5, %s2891_s0, %s2659_s6, %s2659_s6, %s2660_s26  }
  0x56   : > { %s2918_s7 = sand.u32 1, %s2633_s25  }
  0x57   : > { %s687_s16 = scalar_lea.sflag [#allocation4], %s2918_s7 }
  0x58   : > { %2600 = dma.done.wait (%p2833_p8), %s687_s16, 16  }
  0x59   : > { %2602 = vsyncadd (%p2833_p8), %s687_s16, 4294967280  ;;  %s695_s1 = sand.u32 1, %s2808_s17  }
  0x5a   : > { %s696_s5 = scalar_lea.sflag [#allocation7], %s695_s1 }
  0x5b   : > { %2604 = dma.done.wait (%p2833_p8), %s696_s5, 80  }
  0x5c   : > { %2606 = vsyncadd (%p2833_p8), %s696_s5, 4294967216  ;;  %s2039_s10 = sshll.u32 %s2918_s7, 2  ;;  %s715_s13 = scalar_lea.sflag [#allocation10], %s695_s1 }
  0x5d   : > { %s2933_s15 = scalar_lea.vmem [#allocation8], %s2039_s10  ;;  %s2935_s24 = scalar_lea.vmem [#allocation9], %s2039_s10 }
  0x5e   : > { %3305 = sst [smem:[#allocation32_spill]] %s2935_s24 }
  0x5f   : > { %2608 = dma.done.wait (%p2833_p8), %s715_s13, 320  }
  0x60   : > { %2610 = vsyncadd (%p2833_p8), %s715_s13, 4294966976  ;;  %s2041_s17 = sshll.u32 %s2918_s7, 4  ;;  %s3255_s8 = sand.u32 1, %s2621_s22  }
  0x61   : > { %s2042_s9 = sshll.u32 %s3255_s8, 4  ;;  %p841_p7 = scmp.lt.s32.totalorder %s2645_s28, 1 }
  0x62   : > { %p846_p9 = scmp.lt.s32.totalorder %s2641_s27, 1  ;;  %s3306_s18 = sld [smem:[#allocation35_spill]] }
  0x63   : > { %s842_s20 = scalar_select %p841_p7, %s2645_s28, 1 }
  0x64   : > { %s2949_s23 = scalar_select %p846_p9, %s2641_s27, 1 }
  0x65   : > { %s2152_s19 = sshll.u32 %s842_s20, 4  ;;  %s3307_s3 = sld [smem:[#allocation38_spill]] }
  0x66   : > { %s2153_s21 = sshll.u32 %s2949_s23, 4  ;;  %s3308_s4 = sld [smem:[#allocation39_spill]] }
  0x67   : > { %s3309_s0 = sld [smem:[#allocation40_spill]]  ;;  %s2157_s24 = sshll.u32 %s2949_s23, 6 }
  0x68   : > { %s845_s2 = scalar_lea.vmem %s3306_s18, %s2152_s19  ;;  %s3311_s14 = sld [smem:[#allocation43_spill]] }
  0x69   : > { %s3313_s6 = sld [smem:[#allocation44_spill]]  ;;  %p2055_p8 = scmp.ne.s32.totalorder %s2641_s27, 0 }
  0x6a   : > { %s3314_s25 = sld [smem:[#allocation45_spill]] }
  0x6b   : > { %s2958_s16 = scalar_lea.vmem %s3307_s3, %s2153_s21  ;;  %s3315_s22 = sld [smem:[#allocation46_spill]] }
  0x6c   : > { %s2963_s10 = scalar_lea.vmem %s3308_s4, %s2153_s21  ;;  %s3316_s13 = sld [smem:[#allocation48_spill]] }
  0x6d   : > { %s2968_s11 = scalar_lea.vmem %s3309_s0, %s2153_s21  ;;  %s3317_s20 = sld [smem:[#allocation50_spill]] }
  0x6e   : > { %3310 = sst [smem:[#allocation33_spill]] %s2968_s11  ;;  %s2973_s19 = scalar_lea.vmem %s3311_s14, %s2153_s21 }
  0x6f   : > { %3312 = sst [smem:[#allocation34_spill]] %s2973_s19  ;;  %s868_s26 = scalar_lea.vmem %s3313_s6, %s2949_s23 }
  0x70   : > { %s871_s1 = scalar_lea.vmem %s3314_s25, %s2949_s23  ;;  %s3318_s18 = sld [smem:[#allocation49_spill]] }
  0x71   : > { %s874_s28 = scalar_lea.vmem %s3315_s22, %s2949_s23  ;;  %s3001_s3 = scalar_lea.vmem [#allocation11], %s2041_s17 }
  0x72   : > { %s877_s11 = scalar_lea.vmem %s3316_s13, %s2949_s23  ;;  %s3003_s25 = scalar_lea.vmem [#allocation12], %s2042_s9 }
  0x73   : > { %s885_s14 = scalar_lea.vmem %s3317_s20, %s2949_s23  ;;  %890 = sbr.rel (%p2055_p8) target bundleno = 123 (0x7b), region = 108 }
  0x76   : > { %s2999_s6 = scalar_lea.vmem %s3318_s18, %s2157_s24 }
  0x78   : > { %v891_v0 = vld [vmem:[%s845_s2] sm:$0xff]  ;;  %vm893_vm0 = vcmask 261120   ;;  %v892_v1 = vld [vmem:[%s845_s2 + $0x8] sm:$0xff] }
  0x79   : > { %894 = vst.msk [vmem:[#allocation2] sm:$0xff] %vm893_vm0, %v891_v0 }
  0x7a   : > { %895 = vst.msk [vmem:[#allocation2 + $0x8] sm:$0xff] %vm893_vm0, %v892_v1 }
  0x7b PF: > { %vm900_vm1 = vcmask 261120   ;;  %v2661_v6 = vmov 32.0   ;;  %v2159_v23 = vld [vmem:[%s2958_s16 + $0x8] sm:$0xff]  ;;  %v2158_v25 = vld [vmem:[%s2958_s16] sm:$0xff]  ;;  %s3319_s4 = scalar_lea.vmem [#allocation3], %s2918_s7  ;;  %s3320_s22 = scalar_lea.vmem [#allocation6], %s2918_s7 }
  0x7c   : > { %2331 = vrcp.f32 %v2661_v6  ;;  %988 = vmatpush.bf16.msra.mxu0 %v2159_v23  ;;  %v2324_v44 = vld [vmem:[%s3319_s4] ss:$0 sm:$0xff]  ;;  %s3321_s29 = sld [smem:[#allocation32_spill]]  ;;  %v2161_v53 = vld [vmem:[%s2963_s10 + $0x8] sm:$0xff]  ;;  %v996_v55 = vld [vmem:[%s2933_s15] sm:$0xf] }
  0x7d   : > { %v2325_v49 = vld [vmem:[%s3320_s22] ss:$0 sm:$0xff]  ;;  %vm997_vm9 = vcmask 130048   ;;  %vm1106_vm10 = vcmask 64512   ;;  %s2662_s7 = smov 104   ;;  %s2663_s15 = smov 112  }
  0x7e   : > { %v2160_v56 = vld [vmem:[%s2963_s10] sm:$0xff]  ;;  %s2664_s24 = smov 120   ;;  %s3322_s17 = sld [smem:[#allocation33_spill]]  ;;  %vm1153_vm11 = vcmask 1043456   ;;  %vm1412_vm12 = vcmask 195584  }
  0x7f   : > { %s3323_s9 = sld [smem:[#allocation34_spill]]  ;;  %s2665_s2 = smov 8  }
  0x80   : > { %v3006_v2 = vld [vmem:[#allocation2] sm:$0xff]  ;;  %989 = vmatpush.bf16.msra.mxu0 %v2158_v25  ;;  %s2666_s16 = smov 24   ;;  %s2667_s10 = smov 16  }
  0x81   : > { %v901_v3 = vsel %vm900_vm1, %v3006_v2, 0.0  ;;  %v3010_v4 = vld [vmem:[#allocation2 + $0x8] sm:$0xff]  ;;  %p2145_p10 = scmp.ne.s32.totalorder %s2641_s27, 1 }
  0x82   : > { %902 = vadd.xlane.f32.xlu0 %v901_v3  ;;  %v904_v5 = vsel %vm900_vm1, %v3010_v4, 0.0  ;;  %v2332_v7 = vpop.eup %2331  ;;  %v1015_v57 = vld [vmem:[%s3321_s29] sm:$0xf] }
  0x83   : > { %v908_v8 = vmul.f32 32.0, %v2332_v7  ;;  %vm912_vm2 = vweird.f32 %v2332_v7 }
  0x85   : > { %v909_v9 = vsub.f32 1.0, %v908_v8 }
  0x87   : > { %v910_v10 = vmul.f32 %v2332_v7, %v909_v9 }
  0x89   : > { %v911_v11 = vadd.f32 %v2332_v7, %v910_v10 }
  0x8a   : > { %905 = vadd.xlane.f32.xlu0 %v904_v5 }
  0x8b   : > { %v3014_v12 = vsel %vm912_vm2, %v2332_v7, %v911_v11 }
  0xf5   : > { %v903_v13 = vpop.xlane.xlu0 %902 }
  0xf6   : > { %v914_v14 = vmul.f32 %v3014_v12, %v903_v13 }
  0xf8   : > { %v916_v15 = vsub.f32 %v3006_v2, %v914_v14 }
  0xfa   : > { %v918_v16 = vmul.f32 %v916_v15, %v916_v15 }
  0xfc   : > { %v920_v17 = vsel %vm900_vm1, %v918_v16, 0.0 }
  0xfd   : > { %921 = vadd.xlane.f32.xlu1 %v920_v17  ;;  %v906_v18 = vpop.xlane.xlu0 %905 }
  0xfe   : > { %v915_v19 = vmul.f32 %v3014_v12, %v906_v18 }
 0x100   : > { %v917_v20 = vsub.f32 %v3010_v4, %v915_v19  ;;  %v2163_v19 = vld [vmem:[%s3322_s17 + $0x8] sm:$0xff] }
 0x102   : > { %v919_v21 = vmul.f32 %v917_v20, %v917_v20 }
 0x104   : > { %v923_v22 = vsel %vm900_vm1, %v919_v21, 0.0 }
 0x105   : > { %924 = vadd.xlane.f32.xlu1 %v923_v22 }
 0x170   : > { %v922_v24 = vpop.xlane.xlu1 %921 }
 0x171   : > { %v926_v26 = vmul.f32 %v922_v24, %v3014_v12  ;;  %v2162_v24 = vld [vmem:[%s3322_s17] sm:$0xff] }
 0x173   : > { %v928_v27 = vadd.f32 1e-05, %v926_v26 }
 0x175   : > { %2333 = vrsqrt.f32 %v928_v27  ;;  %vm936_vm4 = vweird.f32 %v928_v27 }
 0x178   : > { %v925_v28 = vpop.xlane.xlu1 %924 }
 0x179   : > { %v927_v29 = vmul.f32 %v925_v28, %v3014_v12 }
 0x17b   : > { %v2334_v30 = vpop.eup %2333  ;;  %v929_v31 = vadd.f32 1e-05, %v927_v29 }
 0x17c   : > { %v931_v32 = vmul.f32 %v2334_v30, %v928_v27  ;;  %vm937_vm3 = vweird.f32 %v2334_v30 }
 0x17d   : > { %2335 = vrsqrt.f32 %v929_v31  ;;  %vm938_vm5 = vmor %vm936_vm4, %vm937_vm3  ;;  %vm946_vm7 = vweird.f32 %v929_v31 }
 0x17e   : > { %v932_v33 = vmul.f32 %v2334_v30, %v931_v32 }
 0x180   : > { %v933_v34 = vmul.f32 0.5, %v932_v33 }
 0x182   : > { %v934_v35 = vsub.f32 1.5, %v933_v34 }
 0x183   : > { %v2336_v36 = vpop.eup %2335 }
 0x184   : > { %v935_v37 = vmul.f32 %v2334_v30, %v934_v35  ;;  %v941_v38 = vmul.f32 %v2336_v36, %v929_v31  ;;  %vm947_vm6 = vweird.f32 %v2336_v36 }
 0x185   : > { %vm948_vm8 = vmor %vm946_vm7, %vm947_vm6 }
 0x186   : > { %v942_v39 = vmul.f32 %v2336_v36, %v941_v38  ;;  %v939_v40 = vsel %vm938_vm5, %v2334_v30, %v935_v37 }
 0x187   : > { %v950_v43 = vmul.f32 %v939_v40, %v916_v15 }
 0x188   : > { %v943_v41 = vmul.f32 0.5, %v942_v39 }
 0x189   : > { %v955_v48 = vmul.f32 %v2324_v44, %v950_v43 }
 0x18a   : > { %v944_v42 = vsub.f32 1.5, %v943_v41 }
 0x18b   : > { %v960_v51 = vadd.f32 %v2325_v49, %v955_v48 }
 0x18c   : > { %v945_v45 = vmul.f32 %v2336_v36, %v944_v42 }
 0x18e   : > { %v949_v46 = vsel %vm948_vm8, %v2336_v36, %v945_v45 }
 0x18f   : > { %v951_v47 = vmul.f32 %v949_v46, %v917_v20 }
 0x191   : > { %v956_v50 = vmul.f32 %v2324_v44, %v951_v47 }
 0x193   : > { %v961_v52 = vadd.f32 %v2325_v49, %v956_v50 }
 0x195   : > { %v962_v54 = vpack.c.bf16 %v961_v52, %v960_v51 }
 0x197   : > { %2064 = vmatmul.msk.bf16.vlgmr.msra.gmra.mxu0 %vm900_vm1, %v962_v54  ;;  %1008 = vmatpush.bf16.msra.mxu1 %v962_v54 }
 0x198   : > { %1026 = vmatpush.bf16.msra.mxu2 %v962_v54 }
 0x19a   : > { %2065 = vmatmul.msk.bf16.vlgmr.msra.gmra.mxu1 %vm997_vm9, %v996_v55 }
 0x19b   : > { %1058 = vmatpush.bf16.msrb.mxu1 %v2161_v53  ;;  %2066 = vmatmul.msk.bf16.vlgmr.msra.gmra.mxu2 %vm997_vm9, %v1015_v57 }
 0x19f   : > { %1059 = vmatpush.bf16.msrb.mxu1 %v2160_v56 }
 0x1a3   : > { %1090 = vmatpush.bf16.msra.mxu1 %v2163_v19 }
 0x1a7   : > { %1091 = vmatpush.bf16.msra.mxu1 %v2162_v24 }
 0x214   : > { %v991_v61 = vpop.f32.mrf.mxu0 }
 0x215   : > { %v1097_v3 = vpack.c.bf16 %v991_v61, %v991_v61 }
 0x217   : > { %v1010_v58 = vpop.f32.mrf.mxu1  ;;  %v1103_v9 = vunpack.c.l.b16 %v1097_v3 }
 0x218   : > { %v1014_v59 = vpack.c.bf16 %v1010_v58, %v1010_v58 }
 0x21a   : > { %2075 = vmatmul.msk.bf16.vlgmr.msrb.gmra.mxu1 %vm900_vm1, %v1014_v59 }
 0x21c   : > { %v993_v62 = vpop.f32.mrf.mxu0 }
 0x21d   : > { %v1098_v0 = vpack.c.bf16 %v993_v62, %v993_v62 }
 0x21e   : > { %v1028_v13 = vpop.f32.mrf.mxu2 }
 0x21f   : > { %v1012_v60 = vpop.f32.mrf.mxu1  ;;  %v1104_v7 = vunpack.c.l.b16 %v1098_v0  ;;  %v1032_v25 = vpack.c.bf16 %v1028_v13, %v1028_v13 }
 0x221   : > { %v1105_v11 = vpack.c.b16 %v1104_v7, %v1103_v9 }
 0x226   : > { %v1030_v16 = vpop.f32.mrf.mxu2 }
 0x22a   : > { %2084 = vmatmul.msk.bf16.vlgmr.msra.gmra.mxu1 %vm900_vm1, %v1032_v25 }
 0x297   : > { %v1061_v63 = vpop.f32.mrf.mxu1 }
 0x298   : > { %v1099_v1 = vpack.c.bf16 %v1061_v63, %v1061_v63 }
 0x29a   : > { %v1174_v5 = vunpack.c.l.b16 %v1099_v1  ;;  %v1111_v6 = vsel %vm1106_vm10, %v1099_v1, 0 }
 0x29b   : > { %1120 = vmatpush.bf16.xpose.msrb.mxu2 %v1111_v6 }
 0x29c   : > { %v1175_v8 = vpack.c.b16 %v1174_v5, %v1174_v5 }
 0x29e   : > { %1317 = vrot.lane.b32.xlu1 %v1175_v8, %s2662_s7  ;;  %1248 = vrot.lane.b32.xlu0 %v1175_v8, %s2663_s15 }
 0x29f   : > { %1176 = vrot.lane.b32.xlu2 %v1175_v8, %s2664_s24  ;;  %v1063_v10 = vpop.f32.mrf.mxu1 }
 0x2a2   : > { %2085 = vmatmul.msk.bf16.vlgmr.msrb.gmra.mxu2 %vm1106_vm10, %v1105_v11 }
 0x2a7   : > { %1171 = vrot.lane.b32.xlu2 %v1105_v11, %s2664_s24  ;;  %v1093_v35 = vpop.f32.mrf.mxu1 }
 0x2a8   : > { %v1100_v55 = vpack.c.bf16 %v1093_v35, %v1093_v35 }
 0x2aa   : > { %v1222_v56 = vunpack.c.l.b16 %v1100_v55  ;;  %v1155_v58 = vsel %vm1153_vm11, %v1100_v55, 0 }
 0x2ab   : > { %1164 = vmatpush.bf16.msrb.mxu0 %v1155_v58 }
 0x2ac   : > { %v1223_v57 = vpack.c.b16 %v1222_v56, %v1222_v56 }
 0x2af   : > { %1246 = vrot.lane.b32.xlu2 %v1105_v11, %s2663_s15  ;;  %v1095_v42 = vpop.f32.mrf.mxu1 }
 0x2b7   : > { %1315 = vrot.lane.b32.xlu2 %v1105_v11, %s2662_s7 }
 0x2f9   : > { %v1177_v14 = vpop.permute.xlu2 %1176 }
 0x2fa   : > { %v1182_v15 = vsel %vm1106_vm10, %v1177_v14, 0 }
 0x2fb   : > { %1191 = vmatpush.bf16.xpose.msra.mxu3 %v1182_v15 }
 0x301   : > { %v1172_v17 = vpop.permute.xlu2 %1171 }
 0x302   : > { %2087 = vmatmul.msk.bf16.vlgmr.msra.gmra.mxu3 %vm1106_vm10, %v1172_v17 }
 0x309   : > { %v1247_v18 = vpop.permute.xlu2 %1246 }
 0x310   : > { %v1318_v20 = vpop.permute.xlu1 %1317  ;;  %v1249_v21 = vpop.permute.xlu0 %1248 }
 0x311   : > { %v1254_v22 = vsel %vm1106_vm10, %v1249_v21, 0  ;;  %v1323_v23 = vsel %vm1106_vm10, %v1318_v20, 0  ;;  %v1316_v26 = vpop.permute.xlu2 %1315 }
 0x312   : > { %1263 = vmatpush.bf16.xpose.msra.mxu2 %v1254_v22  ;;  %1332 = vmatpush.bf16.xpose.msrb.mxu3 %v1323_v23 }
 0x319   : > { %2089 = vmatmul.msk.bf16.vlgmr.msra.gmra.mxu2 %vm1106_vm10, %v1247_v18  ;;  %2091 = vmatmul.msk.bf16.vlgmr.msrb.gmra.mxu3 %vm1106_vm10, %v1316_v26 }
 0x325   : > { %v1122_v27 = vpop.f32.mrf.mxu2 }
 0x326   : > { %v1127_v28 = vsel %vm1106_vm10, %v1122_v27, -inf }
 0x327   : > { %1128 = vmax.xlane.f32.xlu2 %v1127_v28 }
 0x32d   : > { %v1124_v29 = vpop.f32.mrf.mxu2 }
 0x32e   : > { %v1130_v30 = vsel %vm1106_vm10, %v1124_v29, -inf }
 0x32f   : > { %1131 = vmax.xlane.f32.xlu0 %v1130_v30 }
 0x385   : > { %v1193_v31 = vpop.f32.mrf.mxu3 }
 0x386   : > { %v1198_v32 = vsel %vm1106_vm10, %v1193_v31, -inf }
 0x387   : > { %1199 = vmax.xlane.f32.xlu1 %v1198_v32 }
 0x38d   : > { %v1195_v33 = vpop.f32.mrf.mxu3 }
 0x38e   : > { %v1201_v34 = vsel %vm1106_vm10, %v1195_v33, -inf }
 0x38f   : > { %1202 = vmax.xlane.f32.xlu2 %v1201_v34 }
 0x39a   : > { %v1129_v36 = vpop.xlane.xlu2 %1128 }
 0x39b   : > { %v1133_v37 = vsub.f32 %v1122_v27, %v1129_v36 }
 0x39c   : > { %v1265_v38 = vpop.f32.mrf.mxu2  ;;  %v1334_v39 = vpop.f32.mrf.mxu3 }
 0x39d   : > { %v1339_v40 = vsel %vm1106_vm10, %v1334_v39, -inf  ;;  %v1270_v41 = vsel %vm1106_vm10, %v1265_v38, -inf  ;;  %v1135_v43 = vmul.f32 1.442695, %v1133_v37 }
 0x39e   : > { %1340 = vmax.xlane.f32.xlu1 %v1339_v40  ;;  %1271 = vmax.xlane.f32.xlu0 %v1270_v41 }
 0x39f   : > { %2337 = vpow2.f32 %v1135_v43 }
 0x3a2   : > { %v1132_v44 = vpop.xlane.xlu0 %1131 }
 0x3a3   : > { %v1134_v45 = vsub.f32 %v1124_v29, %v1132_v44 }
 0x3a4   : > { %v1267_v46 = vpop.f32.mrf.mxu2  ;;  %v1336_v47 = vpop.f32.mrf.mxu3 }
 0x3a5   : > { %v1137_v48 = vmul.f32 1.442695, %v1134_v45  ;;  %v1273_v49 = vsel %vm1106_vm10, %v1267_v46, -inf  ;;  %v1342_v50 = vsel %vm1106_vm10, %v1336_v47, -inf  ;;  %v2338_v51 = vpop.eup %2337 }
 0x3a6   : > { %1274 = vmax.xlane.f32.xlu2 %v1273_v49  ;;  %1343 = vmax.xlane.f32.xlu0 %v1342_v50  ;;  %v1139_v53 = vsel %vm1106_vm10, %v2338_v51, 0.0 }
 0x3a7   : > { %2339 = vpow2.f32 %v1137_v48 }
 0x3ad   : > { %v2340_v52 = vpop.eup %2339 }
 0x3ae   : > { %1140 = vadd.xlane.f32.xlu2 %v1139_v53  ;;  %v1142_v54 = vsel %vm1106_vm10, %v2340_v52, 0.0 }
 0x3af   : > { %1143 = vadd.xlane.f32.xlu1 %v1142_v54 }
 0x3c8   : > { %1224 = vrot.lane.b32.xlu1 %v1223_v57, %s2664_s24 }
 0x3fa   : > { %v1200_v59 = vpop.xlane.xlu1 %1199 }
 0x3fb   : > { %v1204_v60 = vsub.f32 %v1193_v31, %v1200_v59 }
 0x3fd   : > { %v1206_v61 = vmul.f32 1.442695, %v1204_v60 }
 0x3ff   : > { %2341 = vpow2.f32 %v1206_v61 }
 0x402   : > { %v1203_v62 = vpop.xlane.xlu2 %1202 }
 0x403   : > { %v1205_v63 = vsub.f32 %v1195_v33, %v1203_v62 }
 0x405   : > { %v2342_v0 = vpop.eup %2341  ;;  %v1208_v1 = vmul.f32 1.442695, %v1205_v63 }
 0x406   : > { %v1210_v3 = vsel %vm1106_vm10, %v2342_v0, 0.0 }
 0x407   : > { %2343 = vpow2.f32 %v1208_v1  ;;  %1211 = vadd.xlane.f32.xlu0 %v1210_v3 }
 0x40d   : > { %v2344_v5 = vpop.eup %2343 }
 0x40e   : > { %v1213_v6 = vsel %vm1106_vm10, %v2344_v5, 0.0 }
 0x40f   : > { %1214 = vadd.xlane.f32.xlu2 %v1213_v6 }
 0x411   : > { %v1272_v7 = vpop.xlane.xlu0 %1271  ;;  %v1341_v8 = vpop.xlane.xlu1 %1340 }
 0x412   : > { %v1276_v9 = vsub.f32 %v1265_v38, %v1272_v7  ;;  %v1345_v11 = vsub.f32 %v1334_v39, %v1341_v8 }
 0x414   : > { %v1278_v10 = vmul.f32 1.442695, %v1276_v9  ;;  %v1347_v13 = vmul.f32 1.442695, %v1345_v11  ;;  %v2165_v11 = vld [vmem:[%s3323_s9 + $0x8] sm:$0xff] }
 0x415   : > { %1445 = vmatpush.bf16.msrb.mxu2 %v2165_v11 }
 0x416   : > { %2345 = vpow2.f32 %v1278_v10 }
 0x417   : > { %2347 = vpow2.f32 %v1347_v13  ;;  %v2164_v13 = vld [vmem:[%s3323_s9] sm:$0xff] }
 0x419   : > { %v1275_v14 = vpop.xlane.xlu2 %1274  ;;  %v1344_v15 = vpop.xlane.xlu0 %1343  ;;  %1446 = vmatpush.bf16.msrb.mxu2 %v2164_v13 }
 0x41a   : > { %v1277_v16 = vsub.f32 %v1267_v46, %v1275_v14  ;;  %v1346_v18 = vsub.f32 %v1336_v47, %v1344_v15 }
 0x41c   : > { %v1280_v17 = vmul.f32 1.442695, %v1277_v16  ;;  %v2346_v19 = vpop.eup %2345  ;;  %v1349_v21 = vmul.f32 1.442695, %v1346_v18 }
 0x41d   : > { %v1282_v20 = vsel %vm1106_vm10, %v2346_v19, 0.0  ;;  %v2348_v24 = vpop.eup %2347 }
 0x41e   : > { %2349 = vpow2.f32 %v1280_v17  ;;  %1283 = vadd.xlane.f32.xlu0 %v1282_v20  ;;  %v1351_v27 = vsel %vm1106_vm10, %v2348_v24, 0.0 }
 0x421   : > { %v1141_v22 = vpop.xlane.xlu2 %1140 }
 0x422   : > { %2351 = vrcp.f32 %v1141_v22  ;;  %v1144_v23 = vpop.xlane.xlu1 %1143 }
 0x423   : > { %2353 = vrcp.f32 %v1144_v23 }
 0x424   : > { %v2350_v25 = vpop.eup %2349  ;;  %2355 = vpow2.f32 %v1349_v21 }
 0x425   : > { %v1285_v26 = vsel %vm1106_vm10, %v2350_v25, 0.0 }
 0x426   : > { %1286 = vadd.xlane.f32.xlu2 %v1285_v26  ;;  %1352 = vadd.xlane.f32.xlu0 %v1351_v27 }
 0x428   : > { %v2352_v28 = vpop.eup %2351 }
 0x429   : > { %v2354_v29 = vpop.eup %2353  ;;  %v1147_v30 = vmul.f32 %v2352_v28, %v2338_v51 }
 0x42a   : > { %v2356_v31 = vpop.eup %2355  ;;  %v1148_v32 = vmul.f32 %v2354_v29, %v2340_v52 }
 0x42b   : > { %v1354_v34 = vsel %vm1106_vm10, %v2356_v31, 0.0 }
 0x42c   : > { %v1149_v33 = vpack.c.bf16 %v1148_v32, %v1147_v30  ;;  %v2326_v30 = vld [vmem:[%s868_s26] ss:$0 sm:$0xff] }
 0x42e   : > { %2086 = vmatmul.msk.bf16.vlgmr.msrb.gmra.mxu0 %vm1106_vm10, %v1149_v33  ;;  %1355 = vadd.xlane.f32.xlu2 %v1354_v34 }
 0x43a   : > { %v1225_v35 = vpop.permute.xlu1 %1224  ;;  %1293 = vrot.lane.b32.xlu0 %v1223_v57, %s2663_s15 }
 0x43b   : > { %v1230_v36 = vsel %vm1153_vm11, %v1225_v35, 0 }
 0x43c   : > { %1239 = vmatpush.bf16.msrb.mxu1 %v1230_v36 }
 0x446   : > { %1362 = vrot.lane.b32.xlu2 %v1223_v57, %s2662_s7 }
 0x47a   : > { %v1212_v37 = vpop.xlane.xlu0 %1211 }
 0x47b   : > { %2357 = vrcp.f32 %v1212_v37 }
 0x481   : > { %v2358_v39 = vpop.eup %2357 }
 0x482   : > { %v1215_v38 = vpop.xlane.xlu2 %1214  ;;  %v1218_v41 = vmul.f32 %v2358_v39, %v2342_v0 }
 0x483   : > { %2359 = vrcp.f32 %v1215_v38 }
 0x489   : > { %v2360_v40 = vpop.eup %2359 }
 0x48a   : > { %v1219_v42 = vmul.f32 %v2360_v40, %v2344_v5 }
 0x48c   : > { %v1220_v43 = vpack.c.bf16 %v1219_v42, %v1218_v41 }
 0x48e   : > { %2088 = vmatmul.msk.bf16.vlgmr.msrb.gmra.mxu1 %vm1106_vm10, %v1220_v43 }
 0x491   : > { %v1284_v44 = vpop.xlane.xlu0 %1283 }
 0x499   : > { %v1287_v45 = vpop.xlane.xlu2 %1286  ;;  %v1353_v46 = vpop.xlane.xlu0 %1352 }
 0x49a   : > { %2361 = vrcp.f32 %v1353_v46 }
 0x4a0   : > { %v2362_v48 = vpop.eup %2361 }
 0x4a1   : > { %v1356_v47 = vpop.xlane.xlu2 %1355  ;;  %v1359_v51 = vmul.f32 %v2362_v48, %v2348_v24 }
 0x4a2   : > { %2363 = vrcp.f32 %v1356_v47  ;;  %v2167_v47 = vld [vmem:[%s3001_s3 + $0x8] sm:$0xff] }
 0x4a3   : > { %2365 = vrcp.f32 %v1287_v45 }
 0x4a4   : > { %2367 = vrcp.f32 %v1284_v44 }
 0x4a8   : > { %v2364_v49 = vpop.eup %2363 }
 0x4a9   : > { %v2366_v50 = vpop.eup %2365  ;;  %v1360_v52 = vmul.f32 %v2364_v49, %v2356_v31  ;;  %v1363_v53 = vpop.permute.xlu2 %1362 }
 0x4aa   : > { %v1368_v54 = vsel %vm1153_vm11, %v1363_v53, 0  ;;  %v2368_v55 = vpop.eup %2367  ;;  %v1291_v57 = vmul.f32 %v2366_v50, %v2350_v25  ;;  %v2166_v50 = vld [vmem:[%s3001_s3] sm:$0xff] }
 0x4ab   : > { %v1361_v56 = vpack.c.bf16 %v1360_v52, %v1359_v51  ;;  %1377 = vmatpush.bf16.msra.mxu1 %v1368_v54  ;;  %v1290_v59 = vmul.f32 %v2368_v55, %v2346_v19  ;;  %v1166_v1 = vpop.f32.mrf.mxu0 }
 0x4ac   : > { %v1294_v58 = vpop.permute.xlu0 %1293 }
 0x4ad   : > { %v1299_v60 = vsel %vm1153_vm11, %v1294_v58, 0  ;;  %v1292_v61 = vpack.c.bf16 %v1291_v57, %v1290_v59 }
 0x4ae   : > { %2092 = vmatmul.msk.bf16.vlgmr.msra.gmra.mxu1 %vm1106_vm10, %v1361_v56  ;;  %1308 = vmatpush.bf16.msra.mxu0 %v1299_v60 }
 0x4b1   : > { %2090 = vmatmul.msk.bf16.vlgmr.msra.gmra.mxu0 %vm1106_vm10, %v1292_v61 }
 0x4b2   : > { %1541 = vmatpush.bf16.msrb.mxu0 %v2167_v47  ;;  %v2170_v47 = vld [vmem:[%s2999_s6 + $0x10] sm:$0xff] }
 0x4b3   : > { %v1168_v3 = vpop.f32.mrf.mxu0 }
 0x4b6   : > { %1542 = vmatpush.bf16.msrb.mxu0 %v2166_v50 }
 0x50b   : > { %v1241_v62 = vpop.f32.mrf.mxu1 }
 0x513   : > { %v1243_v63 = vpop.f32.mrf.mxu1 }
 0x514   : > { %v2309_v0 = vpack.i.bf16 %v1243_v63, %v1241_v62 }
 0x516   : > { %2310 = vrot.lane.b32.xlu1 %v2309_v0, %s2665_s2 }
 0x52b   : > { %v1379_v5 = vpop.f32.mrf.mxu1 }
 0x52e   : > { %v1310_v6 = vpop.f32.mrf.mxu0 }
 0x533   : > { %v1381_v7 = vpop.f32.mrf.mxu1 }
 0x534   : > { %v2319_v8 = vpack.i.bf16 %v1381_v7, %v1379_v5 }
 0x536   : > { %2320 = vrot.lane.b32.xlu0 %v2319_v8, %s2666_s16  ;;  %v1312_v9 = vpop.f32.mrf.mxu0  ;;  %v2328_v8 = vld [vmem:[%s874_s28] ss:$0 sm:$0xff] }
 0x537   : > { %v2314_v10 = vpack.i.bf16 %v1312_v9, %v1310_v6 }
 0x539   : > { %2315 = vrot.lane.b32.xlu1 %v2314_v10, %s2667_s10 }
 0x588   : > { %v2311_v14 = vpop.permute.xlu1 %2310 }
 0x589   : > { %v2313_v15 = vunpack.i.h.bf16 %v2311_v14  ;;  %v2312_v16 = vunpack.i.l.bf16 %v2311_v14 }
 0x58b   : > { %v1409_v21 = vsel %vm1106_vm10, %v1168_v3, %v2313_v15  ;;  %v1408_v22 = vsel %vm1106_vm10, %v1166_v1, %v2312_v16  ;;  %v2329_v16 = vld [vmem:[%s877_s11] ss:$0 sm:$0xff] }
 0x5a8   : > { %v2321_v17 = vpop.permute.xlu0 %2320 }
 0x5a9   : > { %v2323_v23 = vunpack.i.h.bf16 %v2321_v17  ;;  %v2322_v24 = vunpack.i.l.bf16 %v2321_v17 }
 0x5ab   : > { %v2316_v18 = vpop.permute.xlu1 %2315 }
 0x5ac   : > { %v2318_v19 = vunpack.i.h.bf16 %v2316_v18  ;;  %v2317_v20 = vunpack.i.l.bf16 %v2316_v18 }
 0x5ae   : > { %v1411_v25 = vsel %vm997_vm9, %v1409_v21, %v2318_v19  ;;  %v1410_v26 = vsel %vm997_vm9, %v1408_v22, %v2317_v20  ;;  %v2175_v19 = vld [vmem:[%s2999_s6 + $0x38] sm:$0xff]  ;;  %v2174_v22 = vld [vmem:[%s2999_s6 + $0x30] sm:$0xff] }
 0x5af   : > { %v1413_v27 = vsel %vm1412_vm12, %v1410_v26, %v2322_v24  ;;  %v1414_v28 = vsel %vm1412_vm12, %v1411_v25, %v2323_v23  ;;  %1702 = vmatpush.bf16.msra.mxu3 %v2175_v19 }
 0x5b0   : > { %v1415_v29 = vpack.c.bf16 %v1414_v28, %v1413_v27  ;;  %v2173_v28 = vld [vmem:[%s2999_s6 + $0x28] sm:$0xff] }
 0x5b2   : > { %2101 = vmatmul.msk.bf16.vlgmr.msrb.gmra.mxu2 %vm900_vm1, %v1415_v29 }
 0x5b3   : > { %1703 = vmatpush.bf16.msra.mxu3 %v2174_v22 }
 0x5b7   : > { %1704 = vmatpush.bf16.msra.mxu3 %v2173_v28 }
 0x635   : > { %v1448_v31 = vpop.f32.mrf.mxu2 }
 0x636   : > { %v1449_v32 = vadd.f32 %v2326_v30, %v1448_v31 }
 0x638   : > { %v3096_v33 = vadd.f32 %v1449_v32, %v3006_v2 }
 0x63a   : > { %v1457_v34 = vsel %vm900_vm1, %v3096_v33, 0.0 }
 0x63b   : > { %1458 = vadd.xlane.f32.xlu1 %v1457_v34  ;;  %v2172_v34 = vld [vmem:[%s2999_s6 + $0x20] sm:$0xff] }
 0x63c   : > { %1705 = vmatpush.bf16.msra.mxu3 %v2172_v34 }
 0x63d   : > { %v1450_v35 = vpop.f32.mrf.mxu2 }
 0x63e   : > { %v1451_v36 = vadd.f32 %v2326_v30, %v1450_v35 }
 0x640   : > { %v3101_v37 = vadd.f32 %v1451_v36, %v3010_v4 }
 0x642   : > { %v1460_v38 = vsel %vm900_vm1, %v3101_v37, 0.0 }
 0x643   : > { %1461 = vadd.xlane.f32.xlu2 %v1460_v38 }
 0x6ae   : > { %v1459_v39 = vpop.xlane.xlu1 %1458 }
 0x6af   : > { %v1463_v40 = vmul.f32 %v1459_v39, %v3014_v12 }
 0x6b1   : > { %v1465_v2 = vsub.f32 %v3096_v33, %v1463_v40 }
 0x6b3   : > { %v1467_v41 = vmul.f32 %v1465_v2, %v1465_v2 }
 0x6b5   : > { %v1469_v42 = vsel %vm900_vm1, %v1467_v41, 0.0 }
 0x6b6   : > { %v1462_v43 = vpop.xlane.xlu2 %1461  ;;  %1470 = vadd.xlane.f32.xlu0 %v1469_v42 }
 0x6b7   : > { %v1464_v44 = vmul.f32 %v1462_v43, %v3014_v12 }
 0x6b9   : > { %v1466_v4 = vsub.f32 %v3101_v37, %v1464_v44 }
 0x6bb   : > { %v1468_v45 = vmul.f32 %v1466_v4, %v1466_v4 }
 0x6bd   : > { %v1472_v46 = vsel %vm900_vm1, %v1468_v45, 0.0 }
 0x6be   : > { %1473 = vadd.xlane.f32.xlu1 %v1472_v46 }
 0x729   : > { %v1471_v48 = vpop.xlane.xlu0 %1470 }
 0x72a   : > { %v1475_v49 = vmul.f32 %v1471_v48, %v3014_v12 }
 0x72c   : > { %v1477_v51 = vadd.f32 1e-05, %v1475_v49 }
 0x72e   : > { %2369 = vrsqrt.f32 %v1477_v51  ;;  %vm1485_vm14 = vweird.f32 %v1477_v51 }
 0x731   : > { %v1474_v52 = vpop.xlane.xlu1 %1473 }
 0x732   : > { %v1476_v53 = vmul.f32 %v1474_v52, %v3014_v12  ;;  %v2327_v12 = vld [vmem:[%s871_s1] ss:$0 sm:$0xff] }
 0x734   : > { %v2370_v54 = vpop.eup %2369  ;;  %v1478_v55 = vadd.f32 1e-05, %v1476_v53 }
 0x735   : > { %v1480_v56 = vmul.f32 %v2370_v54, %v1477_v51  ;;  %vm1486_vm13 = vweird.f32 %v2370_v54 }
 0x736   : > { %2371 = vrsqrt.f32 %v1478_v55  ;;  %vm1487_vm15 = vmor %vm1485_vm14, %vm1486_vm13  ;;  %vm1495_vm2 = vweird.f32 %v1478_v55 }
 0x737   : > { %v1481_v57 = vmul.f32 %v2370_v54, %v1480_v56 }
 0x739   : > { %v1482_v58 = vmul.f32 0.5, %v1481_v57 }
 0x73b   : > { %v1483_v59 = vsub.f32 1.5, %v1482_v58 }
 0x73c   : > { %v2372_v60 = vpop.eup %2371 }
 0x73d   : > { %v1484_v61 = vmul.f32 %v2370_v54, %v1483_v59  ;;  %v1490_v62 = vmul.f32 %v2372_v60, %v1478_v55  ;;  %vm1496_vm0 = vweird.f32 %v2372_v60  ;;  %v2169_v55 = vld [vmem:[%s2999_s6 + $0x8] sm:$0xff] }
 0x73e   : > { %vm1497_vm3 = vmor %vm1495_vm2, %vm1496_vm0 }
 0x73f   : > { %v1491_v63 = vmul.f32 %v2372_v60, %v1490_v62  ;;  %v1488_v0 = vsel %vm1487_vm15, %v2370_v54, %v1484_v61  ;;  %v2168_v61 = vld [vmem:[%s2999_s6] sm:$0xff] }
 0x740   : > { %v1499_v5 = vmul.f32 %v1488_v0, %v1465_v2  ;;  %v2171_v2 = vld [vmem:[%s2999_s6 + $0x18] sm:$0xff] }
 0x741   : > { %v1492_v1 = vmul.f32 0.5, %v1491_v63  ;;  %1706 = vmatpush.bf16.msra.mxu3 %v2171_v2 }
 0x742   : > { %v1504_v9 = vmul.f32 %v2327_v12, %v1499_v5 }
 0x743   : > { %v1493_v3 = vsub.f32 1.5, %v1492_v1 }
 0x744   : > { %v1509_v13 = vadd.f32 %v2328_v8, %v1504_v9 }
 0x745   : > { %v1494_v6 = vmul.f32 %v2372_v60, %v1493_v3  ;;  %1707 = vmatpush.bf16.msra.mxu3 %v2170_v47 }
 0x747   : > { %v1498_v7 = vsel %vm1497_vm3, %v2372_v60, %v1494_v6 }
 0x748   : > { %v1500_v10 = vmul.f32 %v1498_v7, %v1466_v4 }
 0x749   : > { %1708 = vmatpush.bf16.msra.mxu3 %v2169_v55 }
 0x74a   : > { %v1505_v11 = vmul.f32 %v2327_v12, %v1500_v10 }
 0x74c   : > { %v1510_v14 = vadd.f32 %v2328_v8, %v1505_v11 }
 0x74d   : > { %1709 = vmatpush.bf16.msra.mxu3 %v2168_v61 }
 0x74e   : > { %v1511_v15 = vpack.c.bf16 %v1510_v14, %v1509_v13 }
 0x750   : > { %2110 = vmatmul.msk.bf16.vlgmr.msrb.gmra.mxu0 %vm900_vm1, %v1511_v15 }
 0x7cd   : > { %v1544_v17 = vpop.f32.mrf.mxu0 }
 0x7ce   : > { %v3131_v18 = vadd.f32 %v2329_v16, %v1544_v17 }
 0x7d0   : > { %v3135_v20 = vmul.f32 0.70710677, %v3131_v18 }
 0x7d2   : > { %v1553_v21 = vmul.f32 %v3135_v20, %v3135_v20 }
 0x7d4   : > { %v1554_v23 = vmin.f32 %v1553_v21, 16.0 }
 0x7d5   : > { %v1546_v24 = vpop.f32.mrf.mxu0 }
 0x7d6   : > { %v1555_v25 = vmul.f32 2.1237322e-06, %v1554_v23  ;;  %v1566_v26 = vmul.f32 3.8918573e-05, %v1554_v23  ;;  %v3140_v27 = vadd.f32 %v2329_v16, %v1546_v24 }
 0x7d8   : > { %v1556_v29 = vadd.f32 0.00028619796, %v1555_v25  ;;  %v1567_v30 = vadd.f32 0.001143296, %v1566_v26  ;;  %v3144_v31 = vmul.f32 0.70710677, %v3140_v27 }
 0x7da   : > { %v1568_v32 = vmul.f32 %v1567_v30, %v1554_v23  ;;  %v1593_v35 = vmul.f32 %v3144_v31, %v3144_v31  ;;  %v1557_v36 = vmul.f32 %v1556_v29, %v1554_v23 }
 0x7dc   : > { %v1569_v38 = vadd.f32 0.014752088, %v1568_v32  ;;  %v1594_v39 = vmin.f32 %v1593_v35, 16.0  ;;  %v1558_v43 = vadd.f32 0.0036580483, %v1557_v36 }
 0x7de   : > { %v1570_v40 = vmul.f32 %v1569_v38, %v1554_v23  ;;  %v1595_v41 = vmul.f32 2.1237322e-06, %v1594_v39  ;;  %v1606_v42 = vmul.f32 3.8918573e-05, %v1594_v39  ;;  %v1559_v50 = vmul.f32 %v1558_v43, %v1554_v23 }
 0x7e0   : > { %v1571_v44 = vadd.f32 0.112945676, %v1570_v40  ;;  %v1596_v4 = vadd.f32 0.00028619796, %v1595_v41  ;;  %v1607_v45 = vadd.f32 0.001143296, %v1606_v42 }
 0x7e1   : > { %v1560_v57 = vadd.f32 0.05243302, %v1559_v50 }
 0x7e2   : > { %v1572_v46 = vmul.f32 %v1571_v44, %v1554_v23  ;;  %v1597_v48 = vmul.f32 %v1596_v4, %v1594_v39  ;;  %v1608_v49 = vmul.f32 %v1607_v45, %v1594_v39  ;;  %v1549_v44 = vmul.f32 0.5, %v3131_v18 }
 0x7e3   : > { %v1561_v63 = vmul.f32 %v1560_v57, %v1554_v23  ;;  %v1550_v4 = vmul.f32 0.5, %v3140_v27 }
 0x7e4   : > { %v1573_v51 = vadd.f32 0.4994258, %v1572_v46  ;;  %v1598_v52 = vadd.f32 0.0036580483, %v1597_v48  ;;  %v1609_v53 = vadd.f32 0.014752088, %v1608_v49 }
 0x7e5   : > { %v1562_v5 = vadd.f32 0.18741608, %v1561_v63 }
 0x7e6   : > { %v1574_v54 = vmul.f32 %v1573_v51, %v1554_v23  ;;  %v1610_v56 = vmul.f32 %v1609_v53, %v1594_v39  ;;  %v1599_v59 = vmul.f32 %v1598_v52, %v1594_v39 }
 0x7e7   : > { %v1563_v10 = vmul.f32 %v1562_v5, %v1554_v23 }
 0x7e8   : > { %v1575_v58 = vadd.f32 1.0, %v1574_v54  ;;  %v1611_v60 = vadd.f32 0.112945676, %v1610_v56  ;;  %v1600_v0 = vadd.f32 0.05243302, %v1599_v59 }
 0x7e9   : > { %v1564_v17 = vadd.f32 1.1283791, %v1563_v10 }
 0x7ea   : > { %2373 = vrcp.f32 %v1575_v58  ;;  %v1612_v62 = vmul.f32 %v1611_v60, %v1594_v39  ;;  %v1601_v7 = vmul.f32 %v1600_v0, %v1594_v39  ;;  %v1587_v13 = vand.u32 2147483648, %v1575_v58 }
 0x7eb   : > { %v1585_v15 = vand.u32 2147483647, %v1575_v58  ;;  %vm1581_vm5 = vweird.f32 %v1575_v58  ;;  %v1565_v28 = vmul.f32 %v1564_v17, %v3135_v20 }
 0x7ec   : > { %v1613_v1 = vadd.f32 0.4994258, %v1612_v62  ;;  %v1602_v14 = vadd.f32 0.18741608, %v1601_v7  ;;  %v1588_v22 = vor.u32 1.1754944e-38, %v1587_v13 }
 0x7ed   : > { %vm1586_vm7 = vcmp.eq.f32.partialorder %v1585_v15, 8.507059e+37 }
 0x7ee   : > { %v1614_v3 = vmul.f32 %v1613_v1, %v1594_v39  ;;  %v1603_v24 = vmul.f32 %v1602_v14, %v1594_v39 }
 0x7f0   : > { %v2374_v12 = vpop.eup %2373  ;;  %v1615_v8 = vadd.f32 1.0, %v1614_v3  ;;  %v1604_v23 = vadd.f32 1.1283791, %v1603_v24 }
 0x7f1   : > { %v1577_v6 = vmul.f32 %v2374_v12, %v1575_v58  ;;  %vm1582_vm4 = vweird.f32 %v2374_v12 }
 0x7f2   : > { %2375 = vrcp.f32 %v1615_v8  ;;  %vm1583_vm6 = vmor %vm1581_vm5, %vm1582_vm4  ;;  %v1627_v30 = vand.u32 2147483648, %v1615_v8  ;;  %v1625_v35 = vand.u32 2147483647, %v1615_v8  ;;  %vm1621_vm9 = vweird.f32 %v1615_v8 }
 0x7f3   : > { %v1578_v9 = vsub.f32 1.0, %v1577_v6  ;;  %v1605_v39 = vmul.f32 %v1604_v23, %v3144_v31  ;;  %v2330_v31 = vld [vmem:[%s885_s14] ss:$0 sm:$0xff] }
 0x7f4   : > { %v1628_v38 = vor.u32 1.1754944e-38, %v1627_v30  ;;  %vm1626_vm11 = vcmp.eq.f32.partialorder %v1625_v35, 8.507059e+37 }
 0x7f5   : > { %v1579_v11 = vmul.f32 %v2374_v12, %v1578_v9 }
 0x7f7   : > { %v1580_v16 = vadd.f32 %v2374_v12, %v1579_v11 }
 0x7f8   : > { %v2376_v19 = vpop.eup %2375 }
 0x7f9   : > { %v1584_v21 = vsel %vm1583_vm6, %v2374_v12, %v1580_v16  ;;  %v1617_v25 = vmul.f32 %v2376_v19, %v1615_v8  ;;  %vm1622_vm8 = vweird.f32 %v2376_v19 }
 0x7fa   : > { %v1589_v26 = vsel %vm1586_vm7, %v1588_v22, %v1584_v21  ;;  %vm1623_vm10 = vmor %vm1621_vm9, %vm1622_vm8 }
 0x7fb   : > { %v1618_v29 = vsub.f32 1.0, %v1617_v25  ;;  %v1590_v32 = vmul.f32 %v1589_v26, %v1565_v28 }
 0x7fd   : > { %v1619_v34 = vmul.f32 %v2376_v19, %v1618_v29  ;;  %v2111_v40 = vclamps-f32 %v1590_v32, 1.0 }
 0x7ff   : > { %v1620_v36 = vadd.f32 %v2376_v19, %v1619_v34  ;;  %v1633_v20 = vadd.f32 1.0, %v2111_v40 }
 0x801   : > { %v1624_v2 = vsel %vm1623_vm10, %v2376_v19, %v1620_v36  ;;  %v1635_v46 = vmul.f32 %v1633_v20, %v1549_v44 }
 0x802   : > { %v1629_v41 = vsel %vm1626_vm11, %v1628_v38, %v1624_v2 }
 0x803   : > { %v1630_v42 = vmul.f32 %v1629_v41, %v1605_v39 }
 0x805   : > { %v2112_v43 = vclamps-f32 %v1630_v42, 1.0 }
 0x807   : > { %v1634_v45 = vadd.f32 1.0, %v2112_v43 }
 0x809   : > { %v1636_v47 = vmul.f32 %v1634_v45, %v1550_v4 }
 0x80b   : > { %v1637_v48 = vpack.c.bf16 %v1636_v47, %v1635_v46 }
 0x80d   : > { %1710 = vmatmul.bf16.vlgmr.msra.gmra.mxu3 %v1637_v48 }
 0x890   : > { %v1711_v49 = vpop.f32.mrf.mxu3 }
 0x891   : > { %v1716_v50 = vadd.f32 %v1711_v49, %v3096_v33 }
 0x893   : > { %v1722_v51 = vadd.f32 %v2330_v31, %v1716_v50 }
 0x895   : > { %1724 = vst.msk [vmem:[#allocation2] sm:$0xff] %vm900_vm1, %v1722_v51 }
 0x898   : > { %v1713_v52 = vpop.f32.mrf.mxu3 }
 0x899   : > { %v1717_v18 = vadd.f32 %v1713_v52, %v3101_v37  ;;  %1729 = sbr.rel (%p2145_p10) target bundleno = 2208 (0x8a0), region = 112 }
 0x89b   : > { %v1723_v27 = vadd.f32 %v2330_v31, %v1717_v18 }
 0x89d   : > { %1725 = vst.msk [vmem:[#allocation2 + $0x8] sm:$0xff] %vm900_vm1, %v1723_v27 }
 0x89e   : > { %1730 = vst.msk [vmem:[%s3003_s25] sm:$0xff] %vm900_vm1, %v1722_v51 }
 0x89f   : > { %1731 = vst.msk [vmem:[%s3003_s25 + $0x8] sm:$0xff] %vm900_vm1, %v1723_v27 }
 0x8a0 PF: > { %s3329_s23 = sld [smem:[#allocation22_spill]]  ;;  %s1745_s24 = sshll.u32 %s3003_s25, 4  ;;  %s1746_s24 = int_to_ptr.vmem [resolvable:$true] %s1745_s24 }
 0x8a1   : > { %s3330_s14 = sld [smem:[#allocation18_spill]] }
 0x8a2   : > { %s3332_s7 = sld [smem:[#allocation51_spill]] }
 0x8a6   : > { %s2176_s4 = sshll.u32 %s3329_s23, 4 }
 0x8a7   : > { %s3333_s17 = sand.u32 1, %s3330_s14  }
 0x8a8   : > { %s1744_s15 = scalar_lea.hbm %s3332_s7, %s2176_s4  ;;  %s1733_s9 = scalar_lea.sflag [#allocation5], %s3333_s17 }
 0x8a9   : > { %s1747_s27 = sshll.u32 %s1744_s15, 4  ;;  %s2547_s8 = scalar_lea.hbm %s3332_s7, 32  ;;  %s1748_s27 = int_to_ptr.hbm [resolvable:$true] %s1747_s27 }
 0x8aa   : > { %s2541_s16 = sshra.s32 %s1748_s27, 4  ;;  %s2542_s16 = int_to_ptr.hbm [resolvable:$true] %s2541_s16 }
 0x8ab   : > { %s2543_s10 = scalar_lea.hbm %s2542_s16, 16  ;;  %p2548_p1 = scmp.lt.s32.totalorder %s2542_s16, %s3332_s7 }
 0x8ac   : > { %p2544_p11 = scmp.ne.s32.totalorder %s2542_s16, %s2543_s10  ;;  %p2549_p4 = scmp.lt.s32.totalorder %s2547_s8, %s2543_s10 }
 0x8ae   : > { %p2545_p13 = pnand %p2544_p11, %p2846_p12  ;;  %p2550_p5 = por %p2549_p4, %p2548_p1 }
 0x8b0   : > { %p2546_p0 = pneg %p2545_p13 }
 0x8b2   : > { %p2551_p3 = pnand %p2550_p5, %p2546_p0 }
 0x8b4   : > { %2554 = shalt.err (!%p2551_p3)
}
 0x8b5   : > { %s2668_s25 = smov 128  }
 0x8b6   : > { %2187 = dma.vmem_to_hbm [thread:$0]  (%p2846_p12), %s1746_s24, 256, %s1748_s27, %s1733_s9, %s2668_s25, %s2668_s25, %s2665_s2  }
 0x8b7 PF: > { %s3334_s13 = sld [smem:[#allocation25_spill]] }
 0x8b8   : > { %s3335_s12 = sld [smem:[#allocation17_spill]] }
 0x8bd   : > { %p2210_p6 = scmp.ge.s32.totalorder %s3334_s13, 2 }
 0x8be   : > { %s1762_s20 = sand.u32 1, %s3335_s12  }
 0x8bf   : > { %p2206_p7 = pnand %p2210_p6, %p2856_p2  ;;  %s1763_s1 = scalar_lea.sflag [#allocation5], %s1762_s20 }
 0x8c1   : > { %p2207_p9 = pneg %p2206_p7 }
 0x8c3   : > { %2612 = dma.done.wait (%p2207_p9), %s1763_s1, 256  }
 0x8c4   : > { %2614 = vsyncadd (%p2207_p9), %s1763_s1, 4294967040  ;;  %s38_s0 = sadd.s32 1, %s3334_s13   ;;  %s3337_s21 = sld [smem:[#allocation18_spill]] }
 0x8c5   : > { %p35_p8 = scmp.ge.s32.totalorder %s38_s0, 6   ;;  %s3338_s22 = sld [smem:[#allocation19_spill]] }
 0x8c6   : > { %s3339_s23 = sld [smem:[#allocation29_spill]] }
 0x8c7   : > { %s3340_s24 = sld [smem:[#allocation20_spill]] }
 0x8c8   : > { %s3341_s25 = sld [smem:[#allocation21_spill]] }
 0x8c9   : > { %s3342_s26 = sld [smem:[#allocation28_spill]]  ;;  %37 = sbr.rel (!%p35_p8) target bundleno = 31 (0x1f), region = 218 }
 0x8ca   : > { %s3343_s27 = sld [smem:[#allocation23_spill]] }
 0x8cb   : > { %s3344_s28 = sld [smem:[#allocation24_spill]] }
 0x8cc   : > { %s3345_s29 = sld [smem:[#allocation26_spill]] }
 0x8cd   : > { %s3346_s30 = sld [smem:[#allocation27_spill]] }
 0x8ce   :  { %1769 = vsyncpa [#allocation4], 1 }
 0x8cf   :  { %1771 = vsyncpa [#allocation4 + $0x1], 1 }
 0x8d0   :  { %1772 = vsyncpa [#allocation7], 1 }
 0x8d1   :  { %1774 = vsyncpa [#allocation7 + $0x1], 1 }
 0x8d2   :  { %1775 = vsyncpa [#allocation10], 1 }
 0x8d3   :  { %1777 = vsyncpa [#allocation10 + $0x1], 1 }
 0x8d4   :  { %1778 = vsyncpa [#allocation5], 1 }
 0x8d5   :  { %1780 = vsyncpa [#allocation5 + $0x1], 1 }

</bundles_post_ra>
